<compile_context>
chip_gen: v6e
topology: v6e:2x2x1
jax: 0.10.0
libtpu: 0.0.40
codegen_flags: <defaults>
</compile_context>

<pallas_src>
import functools

import numpy as np
import jax
import jax.numpy as jnp
from jax.experimental import pallas as pl
from jax.experimental.pallas import tpu as pltpu

EPS = 1e-5                     # nn.BatchNorm2d default eps
MM_DTYPE = jnp.bfloat16        # MXU operand dtype (f32 accumulation); bf16 is
                               # 2x MXU rate on v5e/v6e and required on v7x.
C1, C2 = 32, 16                # channel widths fixed by the module


def _epm_kernel(x_ref, w1_ref, g1_ref, b1_ref, w2_ref, g2_ref, b2_ref,
                w3_ref, b3_ref, o_ref, patch1_ref, patch2_ref, *, H, W, eps):
    L = x_ref.shape[1]
    inv_l = 1.0 / float(L)

    # In-kernel boundary-index vectors (replaces the old (9, L) HBM mask input).
    # Flattening is (n, h, w) row-major, so col = g % W and row = (g // W) % H.
    # Integer-exact float math (values << 2^23); the +0.5 guard makes the floor
    # robust for non-power-of-two H/W as well.
    g = jax.lax.broadcasted_iota(jnp.int32, (1, L), 1).astype(jnp.float32)
    r = jnp.floor((g + 0.5) * (1.0 / W))                        # g // W
    col = g - r * W                                             # g %  W
    row = r - jnp.floor((r + 0.5) * (1.0 / H)) * H              # (g // W) % H

    def mm(a_ref, b_ref):
        # Both operands already MM_DTYPE; accumulate on the MXU in f32.
        return jnp.dot(a_ref[...], b_ref[...], preferred_element_type=jnp.float32)

    def im2col(feat, patch_ref):
        # feat: (C, L) f32 -- channels on sublanes, flattened N*H*W on lanes.
        # Tap (dy, dx): contribution at flat position g is feat[:, g + dy*W + dx]
        # when that pixel is inside the image ("same" zero padding otherwise)
        # == one XLU lane rotate + an iota-derived boundary select.
        C = feat.shape[0]
        t = 0
        for dy in (-1, 0, 1):
            for dx in (-1, 0, 1):
                s = dy * W + dx
                if s == 0:
                    shifted = feat                               # center tap
                else:
                    # shifted[:, g] = feat[:, (g + s) mod L]; wrapped lanes are
                    # exactly the masked-out (padding) positions.
                    shifted = pltpu.roll(feat, (-s) % L, axis=1)
                conds = []
                if dy < 0:
                    conds.append(row >= float(-dy))
                if dy > 0:
                    conds.append(row < float(H - dy))
                if dx < 0:
                    conds.append(col >= float(-dx))
                if dx > 0:
                    conds.append(col < float(W - dx))
                if conds:
                    valid = conds[0]
                    for c in conds[1:]:
                        valid = jnp.logical_and(valid, c)
                    shifted = jnp.where(valid, shifted, 0.0)
                # Cast fuses into the tap store; slab is MM_DTYPE (bf16).
                patch_ref[pl.ds(t * C, C), :] = shifted.astype(patch_ref.dtype)
                t += 1

    def bn_relu(h, gamma_ref, beta_ref):
        # Train-mode BatchNorm over (N, H, W) == the lane axis, biased variance.
        # Two-pass (centered) variance avoids E[x^2]-E[x]^2 cancellation.
        mean = jnp.sum(h, axis=1, keepdims=True) * inv_l         # (C, 1)
        c = h - mean
        var = jnp.sum(c * c, axis=1, keepdims=True) * inv_l      # (C, 1)
        scale = gamma_ref[...] * jax.lax.rsqrt(var + eps)
        return jnp.maximum(c * scale + beta_ref[...], 0.0)

    x = x_ref[...]                                               # (Cin, L) f32

    # Conv1 (3x3, no bias): one K = 9*Cin matmul, lane-dense (L-wide) output.
    im2col(x, patch1_ref)
    h1 = mm(w1_ref, patch1_ref)                                  # (32, L) f32
    a1 = bn_relu(h1, g1_ref, b1_ref)
    # TODO(synk): for tiled (large-L) variants, stage a1 in a VMEM scratch ref
    #             to bound its live range across the 9-tap loop.

    # Conv2 (3x3, no bias): one K = 9*32 = 288 matmul.
    im2col(a1, patch2_ref)
    h2 = mm(w2_ref, patch2_ref)                                  # (16, L) f32
    a2 = bn_relu(h2, g2_ref, b2_ref)

    # Conv3 (1x1, bias) + sigmoid: M=1 matmul replaced by VPU broadcast-multiply
    # + 16-sublane reduce (XLU); exp and approx reciprocal run on the EUP.
    z = jnp.sum(a2 * w3_ref[...], axis=0, keepdims=True) + b3_ref[...]   # (1, L)
    o_ref[...] = pl.reciprocal(1.0 + jnp.exp(-z), approx=True)


def _full2d(shape):
    return pl.BlockSpec(shape, lambda i: (0, 0))


def error_prediction_forward(x_nchw, params):
    N, Cin, H, W = x_nchw.shape
    L = N * H * W

    # Channels-first flattened layout: lanes = N*H*W (lane dense), sublanes =
    # channels.  One tiny one-time transform of the input only.
    x_cl = jnp.transpose(x_nchw, (1, 0, 2, 3)).reshape(Cin, L).astype(jnp.float32)

    # Conv weights (Cout, Cin, 3, 3) -> (Cout, 9*Cin), columns ordered
    # (kh, kw, cin) to match the im2col patch rows (tap-major, channel-minor).
    # Pre-cast to the MXU operand dtype (no in-kernel convert on the read path).
    w1m = jnp.transpose(params["w1"], (0, 2, 3, 1)).reshape(C1, 9 * Cin).astype(MM_DTYPE)
    w2m = jnp.transpose(params["w2"], (0, 2, 3, 1)).reshape(C2, 9 * C1).astype(MM_DTYPE)
    w3c = params["w3"].reshape(C2, 1).astype(jnp.float32)     # 1x1 conv: VPU path
    b3 = params["b3"].reshape(1, 1).astype(jnp.float32)
    g1 = params["gamma1"].reshape(C1, 1).astype(jnp.float32)
    be1 = params["beta1"].reshape(C1, 1).astype(jnp.float32)
    g2 = params["gamma2"].reshape(C2, 1).astype(jnp.float32)
    be2 = params["beta2"].reshape(C2, 1).astype(jnp.float32)

    kernel = functools.partial(_epm_kernel, H=H, W=W, eps=EPS)
    y = pl.pallas_call(
        kernel,
        out_shape=jax.ShapeDtypeStruct((1, L), jnp.float32),
        grid=(1,),
        in_specs=[
            _full2d((Cin, L)),
            _full2d((C1, 9 * Cin)), _full2d((C1, 1)), _full2d((C1, 1)),
            _full2d((C2, 9 * C1)), _full2d((C2, 1)), _full2d((C2, 1)),
            _full2d((C2, 1)), _full2d((1, 1)),
        ],
        out_specs=_full2d((1, L)),
        scratch_shapes=[
            pltpu.VMEM((9 * Cin, L), MM_DTYPE),   # conv1 im2col slab (bf16)
            pltpu.VMEM((9 * C1, L), MM_DTYPE),    # conv2 im2col slab (bf16)
        ],
        compiler_params=pltpu.CompilerParams(
            dimension_semantics=("arbitrary",)),
    )(x_cl, w1m, g1, be1, w2m, g2, be2, w3c, b3)

    return y.reshape(N, 1, H, W)


# ----------------------------------------------------------------------------
# Pure-JAX reference (for correctness) and parameter init
# ----------------------------------------------------------------------------
def _reference_forward(x, params):
    dn = ("NCHW", "OIHW", "NCHW")

    def conv(h, w):
        return jax.lax.conv_general_dilated(h, w, (1, 1), "SAME",
                                            dimension_numbers=dn)

    def bn_relu(h, gamma, beta):
        mean = jnp.mean(h, axis=(0, 2, 3), keepdims=True)
        var = jnp.mean((h - mean) ** 2, axis=(0, 2, 3), keepdims=True)
        xh = (h - mean) * jax.lax.rsqrt(var + EPS)
        return jax.nn.relu(xh * gamma.reshape(1, -1, 1, 1) + beta.reshape(1, -1, 1, 1))

    h = bn_relu(conv(x, params["w1"]), params["gamma1"], params["beta1"])
    h = bn_relu(conv(h, params["w2"]), params["gamma2"], params["beta2"])
    z = conv(h, params["w3"]) + params["b3"].reshape(1, -1, 1, 1)
    return jax.nn.sigmoid(z)


def init_params(key, in_channels):
    k1, k2, k3, k4 = jax.random.split(key, 4)
    w1 = jax.random.normal(k1, (C1, in_channels, 3, 3), jnp.float32) / np.sqrt(9 * in_channels)
    w2 = jax.random.normal(k2, (C2, C1, 3, 3), jnp.float32) / np.sqrt(9 * C1)
    w3 = jax.random.normal(k3, (1, C2, 1, 1), jnp.float32) / np.sqrt(C2)
    b3 = 0.1 * jax.random.normal(k4, (1,), jnp.float32)
    return dict(
        w1=w1, gamma1=jnp.ones((C1,), jnp.float32), beta1=jnp.zeros((C1,), jnp.float32),
        w2=w2, gamma2=jnp.ones((C2,), jnp.float32), beta2=jnp.zeros((C2,), jnp.float32),
        w3=w3, b3=b3)


if __name__ == "__main__":
    key = jax.random.PRNGKey(0)
    kx, kp = jax.random.split(key)

    N, Cin, H, W = 2, 4, 16, 16
    x = jax.random.normal(kx, (N, Cin, H, W), jnp.float32)
    params = init_params(kp, Cin)

    fwd = jax.jit(functools.partial(error_prediction_forward, params=params))
    y = fwd(x)
    jax.block_until_ready(y)

    assert y.shape == (N, 1, H, W), y.shape
    assert bool(jnp.all(jnp.isfinite(y)))
    assert bool(jnp.all((y >= 0.0) & (y <= 1.0)))

    # Loose tolerance: the kernel uses bf16 MXU operands (f32 accumulation) and
    # the reference uses TPU default (bf16-pass) conv precision with a different
    # decomposition, so a few-e-3 difference is expected; layout/indexing bugs
    # would show up as O(0.1+).
    y_ref = _reference_forward(x, params)
    err = float(jnp.max(jnp.abs(y - y_ref)))
    assert err < 5e-2, f"mismatch vs reference: {err}"

    print("KERNEL_OK")
</pallas_src>

<mosaic_0001>
module attributes {stable_mosaic.version = 11 : i64} {
  func.func @_epm_kernel(%arg0: i32, %arg1: memref<4x512xf32, #tpu.memory_space<vmem>>, %arg2: memref<32x36xbf16, #tpu.memory_space<vmem>>, %arg3: memref<32x1xf32, #tpu.memory_space<vmem>>, %arg4: memref<32x1xf32, #tpu.memory_space<vmem>>, %arg5: memref<16x288xbf16, #tpu.memory_space<vmem>>, %arg6: memref<16x1xf32, #tpu.memory_space<vmem>>, %arg7: memref<16x1xf32, #tpu.memory_space<vmem>>, %arg8: memref<16x1xf32, #tpu.memory_space<vmem>>, %arg9: memref<1x1xf32, #tpu.memory_space<vmem>>, %arg10: memref<1x512xf32, #tpu.memory_space<vmem>>, %arg11: memref<36x512xbf16, #tpu.memory_space<vmem>>, %arg12: memref<288x512xbf16, #tpu.memory_space<vmem>>) attributes {dimension_semantics = [#tpu.dimension_semantics<arbitrary>], iteration_bounds = array<i64: 1>, scalar_prefetch = 0 : i64, scratch_operands = 2 : i64, tpu.core_type = #tpu.core_type<tc>, window_params = [{pipeline_mode = #tpu.pipeline_mode<synchronous>, transform_indices = @transform_0, window_bounds = array<i64: 4, 512>}, {pipeline_mode = #tpu.pipeline_mode<synchronous>, transform_indices = @transform_1, window_bounds = array<i64: 32, 36>}, {pipeline_mode = #tpu.pipeline_mode<synchronous>, transform_indices = @transform_2, window_bounds = array<i64: 32, 1>}, {pipeline_mode = #tpu.pipeline_mode<synchronous>, transform_indices = @transform_3, window_bounds = array<i64: 32, 1>}, {pipeline_mode = #tpu.pipeline_mode<synchronous>, transform_indices = @transform_4, window_bounds = array<i64: 16, 288>}, {pipeline_mode = #tpu.pipeline_mode<synchronous>, transform_indices = @transform_5, window_bounds = array<i64: 16, 1>}, {pipeline_mode = #tpu.pipeline_mode<synchronous>, transform_indices = @transform_6, window_bounds = array<i64: 16, 1>}, {pipeline_mode = #tpu.pipeline_mode<synchronous>, transform_indices = @transform_7, window_bounds = array<i64: 16, 1>}, {pipeline_mode = #tpu.pipeline_mode<synchronous>, transform_indices = @transform_8, window_bounds = array<i64: 1, 1>}, {pipeline_mode = #tpu.pipeline_mode<synchronous>, transform_indices = @transform_9, window_bounds = array<i64: 1, 512>}]} {
    %0 = tpu.iota {dimensions = array<i32: 1>} : vector<1x512xi32>
    %1 = arith.sitofp %0 : vector<1x512xi32> to vector<1x512xf32>
    %cst = arith.constant 5.000000e-01 : f32
    %2 = vector.broadcast %cst : f32 to vector<1x512xf32>
    %3 = arith.addf %1, %2 : vector<1x512xf32>
    %cst_0 = arith.constant 6.250000e-02 : f32
    %4 = vector.broadcast %cst_0 : f32 to vector<1x512xf32>
    %5 = arith.mulf %3, %4 : vector<1x512xf32>
    %6 = math.floor %5 : vector<1x512xf32>
    %cst_1 = arith.constant 1.600000e+01 : f32
    %7 = vector.broadcast %cst_1 : f32 to vector<1x512xf32>
    %8 = arith.mulf %6, %7 : vector<1x512xf32>
    %9 = arith.subf %1, %8 : vector<1x512xf32>
    %cst_2 = arith.constant 5.000000e-01 : f32
    %10 = vector.broadcast %cst_2 : f32 to vector<1x512xf32>
    %11 = arith.addf %6, %10 : vector<1x512xf32>
    %cst_3 = arith.constant 6.250000e-02 : f32
    %12 = vector.broadcast %cst_3 : f32 to vector<1x512xf32>
    %13 = arith.mulf %11, %12 : vector<1x512xf32>
    %14 = math.floor %13 : vector<1x512xf32>
    %cst_4 = arith.constant 1.600000e+01 : f32
    %15 = vector.broadcast %cst_4 : f32 to vector<1x512xf32>
    %16 = arith.mulf %14, %15 : vector<1x512xf32>
    %17 = arith.subf %6, %16 : vector<1x512xf32>
    %c0 = arith.constant 0 : index
    %c0_5 = arith.constant 0 : index
    %18 = vector.load %arg1[%c0, %c0_5] : memref<4x512xf32, #tpu.memory_space<vmem>>, vector<4x512xf32>
    %c17_i32 = arith.constant 17 : i32
    %19 = tpu.dynamic_rotate %18 by %c17_i32 dim 1 : vector<4x512xf32>, i32 -> vector<4x512xf32>
    %cst_6 = arith.constant 1.000000e+00 : f32
    %20 = vector.broadcast %cst_6 : f32 to vector<1x512xf32>
    %21 = arith.cmpf oge, %17, %20 : vector<1x512xf32>
    %cst_7 = arith.constant 1.000000e+00 : f32
    %22 = vector.broadcast %cst_7 : f32 to vector<1x512xf32>
    %23 = arith.cmpf oge, %9, %22 : vector<1x512xf32>
    %24 = arith.andi %21, %23 : vector<1x512xi1>
    %cst_8 = arith.constant 0.000000e+00 : f32
    %25 = vector.shape_cast %24 : vector<1x512xi1> to vector<1x512xi1>
    %26 = vector.broadcast %25 : vector<1x512xi1> to vector<4x512xi1>
    %27 = vector.broadcast %cst_8 : f32 to vector<4x512xf32>
    %28 = arith.select %26, %19, %27 : vector<4x512xi1>, vector<4x512xf32>
    %29 = arith.truncf %28 : vector<4x512xf32> to vector<4x512xbf16>
    %c0_9 = arith.constant 0 : index
    %c0_10 = arith.constant 0 : index
    %30 = vector.load %arg11[%c0_9, %c0_10] : memref<36x512xbf16, #tpu.memory_space<vmem>>, vector<4x512xbf16>
    tpu.vector_store %arg11[%c0_9, %c0_10], %29 {strides = array<i32>} : memref<36x512xbf16, #tpu.memory_space<vmem>>, vector<4x512xbf16>,
    %c16_i32 = arith.constant 16 : i32
    %31 = tpu.dynamic_rotate %18 by %c16_i32 dim 1 : vector<4x512xf32>, i32 -> vector<4x512xf32>
    %cst_11 = arith.constant 1.000000e+00 : f32
    %32 = vector.broadcast %cst_11 : f32 to vector<1x512xf32>
    %33 = arith.cmpf oge, %17, %32 : vector<1x512xf32>
    %cst_12 = arith.constant 0.000000e+00 : f32
    %34 = vector.shape_cast %33 : vector<1x512xi1> to vector<1x512xi1>
    %35 = vector.broadcast %34 : vector<1x512xi1> to vector<4x512xi1>
    %36 = vector.broadcast %cst_12 : f32 to vector<4x512xf32>
    %37 = arith.select %35, %31, %36 : vector<4x512xi1>, vector<4x512xf32>
    %38 = arith.truncf %37 : vector<4x512xf32> to vector<4x512xbf16>
    %c4 = arith.constant 4 : index
    %c0_13 = arith.constant 0 : index
    %39 = vector.load %arg11[%c4, %c0_13] : memref<36x512xbf16, #tpu.memory_space<vmem>>, vector<4x512xbf16>
    tpu.vector_store %arg11[%c4, %c0_13], %38 {strides = array<i32>} : memref<36x512xbf16, #tpu.memory_space<vmem>>, vector<4x512xbf16>,
    %c15_i32 = arith.constant 15 : i32
    %40 = tpu.dynamic_rotate %18 by %c15_i32 dim 1 : vector<4x512xf32>, i32 -> vector<4x512xf32>
    %cst_14 = arith.constant 1.000000e+00 : f32
    %41 = vector.broadcast %cst_14 : f32 to vector<1x512xf32>
    %42 = arith.cmpf oge, %17, %41 : vector<1x512xf32>
    %cst_15 = arith.constant 1.500000e+01 : f32
    %43 = vector.broadcast %cst_15 : f32 to vector<1x512xf32>
    %44 = arith.cmpf olt, %9, %43 : vector<1x512xf32>
    %45 = arith.andi %42, %44 : vector<1x512xi1>
    %cst_16 = arith.constant 0.000000e+00 : f32
    %46 = vector.shape_cast %45 : vector<1x512xi1> to vector<1x512xi1>
    %47 = vector.broadcast %46 : vector<1x512xi1> to vector<4x512xi1>
    %48 = vector.broadcast %cst_16 : f32 to vector<4x512xf32>
    %49 = arith.select %47, %40, %48 : vector<4x512xi1>, vector<4x512xf32>
    %50 = arith.truncf %49 : vector<4x512xf32> to vector<4x512xbf16>
    %c8 = arith.constant 8 : index
    %c0_17 = arith.constant 0 : index
    %51 = vector.load %arg11[%c8, %c0_17] : memref<36x512xbf16, #tpu.memory_space<vmem>>, vector<4x512xbf16>
    tpu.vector_store %arg11[%c8, %c0_17], %50 {strides = array<i32>} : memref<36x512xbf16, #tpu.memory_space<vmem>>, vector<4x512xbf16>,
    %c1_i32 = arith.constant 1 : i32
    %52 = tpu.dynamic_rotate %18 by %c1_i32 dim 1 : vector<4x512xf32>, i32 -> vector<4x512xf32>
    %cst_18 = arith.constant 1.000000e+00 : f32
    %53 = vector.broadcast %cst_18 : f32 to vector<1x512xf32>
    %54 = arith.cmpf oge, %9, %53 : vector<1x512xf32>
    %cst_19 = arith.constant 0.000000e+00 : f32
    %55 = vector.shape_cast %54 : vector<1x512xi1> to vector<1x512xi1>
    %56 = vector.broadcast %55 : vector<1x512xi1> to vector<4x512xi1>
    %57 = vector.broadcast %cst_19 : f32 to vector<4x512xf32>
    %58 = arith.select %56, %52, %57 : vector<4x512xi1>, vector<4x512xf32>
    %59 = arith.truncf %58 : vector<4x512xf32> to vector<4x512xbf16>
    %c12 = arith.constant 12 : index
    %c0_20 = arith.constant 0 : index
    %60 = vector.load %arg11[%c12, %c0_20] : memref<36x512xbf16, #tpu.memory_space<vmem>>, vector<4x512xbf16>
    tpu.vector_store %arg11[%c12, %c0_20], %59 {strides = array<i32>} : memref<36x512xbf16, #tpu.memory_space<vmem>>, vector<4x512xbf16>,
    %61 = arith.truncf %18 : vector<4x512xf32> to vector<4x512xbf16>
    %c16 = arith.constant 16 : index
    %c0_21 = arith.constant 0 : index
    %62 = vector.load %arg11[%c16, %c0_21] : memref<36x512xbf16, #tpu.memory_space<vmem>>, vector<4x512xbf16>
    tpu.vector_store %arg11[%c16, %c0_21], %61 {strides = array<i32>} : memref<36x512xbf16, #tpu.memory_space<vmem>>, vector<4x512xbf16>,
    %c511_i32 = arith.constant 511 : i32
    %63 = tpu.dynamic_rotate %18 by %c511_i32 dim 1 : vector<4x512xf32>, i32 -> vector<4x512xf32>
    %cst_22 = arith.constant 1.500000e+01 : f32
    %64 = vector.broadcast %cst_22 : f32 to vector<1x512xf32>
    %65 = arith.cmpf olt, %9, %64 : vector<1x512xf32>
    %cst_23 = arith.constant 0.000000e+00 : f32
    %66 = vector.shape_cast %65 : vector<1x512xi1> to vector<1x512xi1>
    %67 = vector.broadcast %66 : vector<1x512xi1> to vector<4x512xi1>
    %68 = vector.broadcast %cst_23 : f32 to vector<4x512xf32>
    %69 = arith.select %67, %63, %68 : vector<4x512xi1>, vector<4x512xf32>
    %70 = arith.truncf %69 : vector<4x512xf32> to vector<4x512xbf16>
    %c20 = arith.constant 20 : index
    %c0_24 = arith.constant 0 : index
    %71 = vector.load %arg11[%c20, %c0_24] : memref<36x512xbf16, #tpu.memory_space<vmem>>, vector<4x512xbf16>
    tpu.vector_store %arg11[%c20, %c0_24], %70 {strides = array<i32>} : memref<36x512xbf16, #tpu.memory_space<vmem>>, vector<4x512xbf16>,
    %c497_i32 = arith.constant 497 : i32
    %72 = tpu.dynamic_rotate %18 by %c497_i32 dim 1 : vector<4x512xf32>, i32 -> vector<4x512xf32>
    %cst_25 = arith.constant 1.500000e+01 : f32
    %73 = vector.broadcast %cst_25 : f32 to vector<1x512xf32>
    %74 = arith.cmpf olt, %17, %73 : vector<1x512xf32>
    %cst_26 = arith.constant 1.000000e+00 : f32
    %75 = vector.broadcast %cst_26 : f32 to vector<1x512xf32>
    %76 = arith.cmpf oge, %9, %75 : vector<1x512xf32>
    %77 = arith.andi %74, %76 : vector<1x512xi1>
    %cst_27 = arith.constant 0.000000e+00 : f32
    %78 = vector.shape_cast %77 : vector<1x512xi1> to vector<1x512xi1>
    %79 = vector.broadcast %78 : vector<1x512xi1> to vector<4x512xi1>
    %80 = vector.broadcast %cst_27 : f32 to vector<4x512xf32>
    %81 = arith.select %79, %72, %80 : vector<4x512xi1>, vector<4x512xf32>
    %82 = arith.truncf %81 : vector<4x512xf32> to vector<4x512xbf16>
    %c24 = arith.constant 24 : index
    %c0_28 = arith.constant 0 : index
    %83 = vector.load %arg11[%c24, %c0_28] : memref<36x512xbf16, #tpu.memory_space<vmem>>, vector<4x512xbf16>
    tpu.vector_store %arg11[%c24, %c0_28], %82 {strides = array<i32>} : memref<36x512xbf16, #tpu.memory_space<vmem>>, vector<4x512xbf16>,
    %c496_i32 = arith.constant 496 : i32
    %84 = tpu.dynamic_rotate %18 by %c496_i32 dim 1 : vector<4x512xf32>, i32 -> vector<4x512xf32>
    %cst_29 = arith.constant 1.500000e+01 : f32
    %85 = vector.broadcast %cst_29 : f32 to vector<1x512xf32>
    %86 = arith.cmpf olt, %17, %85 : vector<1x512xf32>
    %cst_30 = arith.constant 0.000000e+00 : f32
    %87 = vector.shape_cast %86 : vector<1x512xi1> to vector<1x512xi1>
    %88 = vector.broadcast %87 : vector<1x512xi1> to vector<4x512xi1>
    %89 = vector.broadcast %cst_30 : f32 to vector<4x512xf32>
    %90 = arith.select %88, %84, %89 : vector<4x512xi1>, vector<4x512xf32>
    %91 = arith.truncf %90 : vector<4x512xf32> to vector<4x512xbf16>
    %c28 = arith.constant 28 : index
    %c0_31 = arith.constant 0 : index
    %92 = vector.load %arg11[%c28, %c0_31] : memref<36x512xbf16, #tpu.memory_space<vmem>>, vector<4x512xbf16>
    tpu.vector_store %arg11[%c28, %c0_31], %91 {strides = array<i32>} : memref<36x512xbf16, #tpu.memory_space<vmem>>, vector<4x512xbf16>,
    %c495_i32 = arith.constant 495 : i32
    %93 = tpu.dynamic_rotate %18 by %c495_i32 dim 1 : vector<4x512xf32>, i32 -> vector<4x512xf32>
    %cst_32 = arith.constant 1.500000e+01 : f32
    %94 = vector.broadcast %cst_32 : f32 to vector<1x512xf32>
    %95 = arith.cmpf olt, %17, %94 : vector<1x512xf32>
    %cst_33 = arith.constant 1.500000e+01 : f32
    %96 = vector.broadcast %cst_33 : f32 to vector<1x512xf32>
    %97 = arith.cmpf olt, %9, %96 : vector<1x512xf32>
    %98 = arith.andi %95, %97 : vector<1x512xi1>
    %cst_34 = arith.constant 0.000000e+00 : f32
    %99 = vector.shape_cast %98 : vector<1x512xi1> to vector<1x512xi1>
    %100 = vector.broadcast %99 : vector<1x512xi1> to vector<4x512xi1>
    %101 = vector.broadcast %cst_34 : f32 to vector<4x512xf32>
    %102 = arith.select %100, %93, %101 : vector<4x512xi1>, vector<4x512xf32>
    %103 = arith.truncf %102 : vector<4x512xf32> to vector<4x512xbf16>
    %c32 = arith.constant 32 : index
    %c0_35 = arith.constant 0 : index
    %104 = vector.load %arg11[%c32, %c0_35] : memref<36x512xbf16, #tpu.memory_space<vmem>>, vector<4x512xbf16>
    tpu.vector_store %arg11[%c32, %c0_35], %103 {strides = array<i32>} : memref<36x512xbf16, #tpu.memory_space<vmem>>, vector<4x512xbf16>,
    %c0_36 = arith.constant 0 : index
    %c0_37 = arith.constant 0 : index
    %105 = vector.load %arg2[%c0_36, %c0_37] : memref<32x36xbf16, #tpu.memory_space<vmem>>, vector<32x36xbf16>
    %c0_38 = arith.constant 0 : index
    %c0_39 = arith.constant 0 : index
    %106 = vector.load %arg11[%c0_38, %c0_39] : memref<36x512xbf16, #tpu.memory_space<vmem>>, vector<36x512xbf16>
    %cst_40 = arith.constant dense<0.000000e+00> : vector<32x512xf32>
    %107 = tpu.matmul %105, %106, %cst_40 {dimension_numbers = #tpu.dot_dimension_numbers<[1], [0], [0], [1], [0, 0, 1, 1], [], []>} : vector<32x36xbf16>, vector<36x512xbf16>, vector<32x512xf32> -> vector<32x512xf32>
    %cst_41 = arith.constant dense<0.000000e+00> : vector<32xf32>
    %108 = vector.multi_reduction <add>, %107, %cst_41 [1] : vector<32x512xf32> to vector<32xf32>
    %109 = vector.shape_cast %108 : vector<32xf32> to vector<32x1xf32>
    %cst_42 = arith.constant 0.001953125 : f32
    %110 = vector.broadcast %cst_42 : f32 to vector<32x1xf32>
    %111 = arith.mulf %109, %110 : vector<32x1xf32>
    %112 = vector.broadcast %111 : vector<32x1xf32> to vector<32x512xf32>
    %113 = arith.subf %107, %112 : vector<32x512xf32>
    %114 = arith.mulf %113, %113 : vector<32x512xf32>
    %cst_43 = arith.constant dense<0.000000e+00> : vector<32xf32>
    %115 = vector.multi_reduction <add>, %114, %cst_43 [1] : vector<32x512xf32> to vector<32xf32>
    %116 = vector.shape_cast %115 : vector<32xf32> to vector<32x1xf32>
    %cst_44 = arith.constant 0.001953125 : f32
    %117 = vector.broadcast %cst_44 : f32 to vector<32x1xf32>
    %118 = arith.mulf %116, %117 : vector<32x1xf32>
    %c0_45 = arith.constant 0 : index
    %c0_46 = arith.constant 0 : index
    %119 = vector.load %arg3[%c0_45, %c0_46] : memref<32x1xf32, #tpu.memory_space<vmem>>, vector<32x1xf32>
    %cst_47 = arith.constant 9.99999974E-6 : f32
    %120 = vector.broadcast %cst_47 : f32 to vector<32x1xf32>
    %121 = arith.addf %118, %120 : vector<32x1xf32>
    %122 = math.rsqrt %121 : vector<32x1xf32>
    %123 = arith.mulf %119, %122 : vector<32x1xf32>
    %124 = vector.broadcast %123 : vector<32x1xf32> to vector<32x512xf32>
    %125 = arith.mulf %113, %124 : vector<32x512xf32>
    %c0_48 = arith.constant 0 : index
    %c0_49 = arith.constant 0 : index
    %126 = vector.load %arg4[%c0_48, %c0_49] : memref<32x1xf32, #tpu.memory_space<vmem>>, vector<32x1xf32>
    %127 = vector.broadcast %126 : vector<32x1xf32> to vector<32x512xf32>
    %128 = arith.addf %125, %127 : vector<32x512xf32>
    %cst_50 = arith.constant 0.000000e+00 : f32
    %129 = vector.broadcast %cst_50 : f32 to vector<32x512xf32>
    %130 = arith.maximumf %128, %129 : vector<32x512xf32>
    %c17_i32_51 = arith.constant 17 : i32
    %131 = tpu.dynamic_rotate %130 by %c17_i32_51 dim 1 : vector<32x512xf32>, i32 -> vector<32x512xf32>
    %cst_52 = arith.constant 1.000000e+00 : f32
    %132 = vector.broadcast %cst_52 : f32 to vector<1x512xf32>
    %133 = arith.cmpf oge, %17, %132 : vector<1x512xf32>
    %cst_53 = arith.constant 1.000000e+00 : f32
    %134 = vector.broadcast %cst_53 : f32 to vector<1x512xf32>
    %135 = arith.cmpf oge, %9, %134 : vector<1x512xf32>
    %136 = arith.andi %133, %135 : vector<1x512xi1>
    %cst_54 = arith.constant 0.000000e+00 : f32
    %137 = vector.shape_cast %136 : vector<1x512xi1> to vector<1x512xi1>
    %138 = vector.broadcast %137 : vector<1x512xi1> to vector<32x512xi1>
    %139 = vector.broadcast %cst_54 : f32 to vector<32x512xf32>
    %140 = arith.select %138, %131, %139 : vector<32x512xi1>, vector<32x512xf32>
    %141 = arith.truncf %140 : vector<32x512xf32> to vector<32x512xbf16>
    %c0_55 = arith.constant 0 : index
    %c0_56 = arith.constant 0 : index
    %142 = vector.load %arg12[%c0_55, %c0_56] : memref<288x512xbf16, #tpu.memory_space<vmem>>, vector<32x512xbf16>
    tpu.vector_store %arg12[%c0_55, %c0_56], %141 {strides = array<i32>} : memref<288x512xbf16, #tpu.memory_space<vmem>>, vector<32x512xbf16>,
    %c16_i32_57 = arith.constant 16 : i32
    %143 = tpu.dynamic_rotate %130 by %c16_i32_57 dim 1 : vector<32x512xf32>, i32 -> vector<32x512xf32>
    %cst_58 = arith.constant 1.000000e+00 : f32
    %144 = vector.broadcast %cst_58 : f32 to vector<1x512xf32>
    %145 = arith.cmpf oge, %17, %144 : vector<1x512xf32>
    %cst_59 = arith.constant 0.000000e+00 : f32
    %146 = vector.shape_cast %145 : vector<1x512xi1> to vector<1x512xi1>
    %147 = vector.broadcast %146 : vector<1x512xi1> to vector<32x512xi1>
    %148 = vector.broadcast %cst_59 : f32 to vector<32x512xf32>
    %149 = arith.select %147, %143, %148 : vector<32x512xi1>, vector<32x512xf32>
    %150 = arith.truncf %149 : vector<32x512xf32> to vector<32x512xbf16>
    %c32_60 = arith.constant 32 : index
    %c0_61 = arith.constant 0 : index
    %151 = vector.load %arg12[%c32_60, %c0_61] : memref<288x512xbf16, #tpu.memory_space<vmem>>, vector<32x512xbf16>
    tpu.vector_store %arg12[%c32_60, %c0_61], %150 {strides = array<i32>} : memref<288x512xbf16, #tpu.memory_space<vmem>>, vector<32x512xbf16>,
    %c15_i32_62 = arith.constant 15 : i32
    %152 = tpu.dynamic_rotate %130 by %c15_i32_62 dim 1 : vector<32x512xf32>, i32 -> vector<32x512xf32>
    %cst_63 = arith.constant 1.000000e+00 : f32
    %153 = vector.broadcast %cst_63 : f32 to vector<1x512xf32>
    %154 = arith.cmpf oge, %17, %153 : vector<1x512xf32>
    %cst_64 = arith.constant 1.500000e+01 : f32
    %155 = vector.broadcast %cst_64 : f32 to vector<1x512xf32>
    %156 = arith.cmpf olt, %9, %155 : vector<1x512xf32>
    %157 = arith.andi %154, %156 : vector<1x512xi1>
    %cst_65 = arith.constant 0.000000e+00 : f32
    %158 = vector.shape_cast %157 : vector<1x512xi1> to vector<1x512xi1>
    %159 = vector.broadcast %158 : vector<1x512xi1> to vector<32x512xi1>
    %160 = vector.broadcast %cst_65 : f32 to vector<32x512xf32>
    %161 = arith.select %159, %152, %160 : vector<32x512xi1>, vector<32x512xf32>
    %162 = arith.truncf %161 : vector<32x512xf32> to vector<32x512xbf16>
    %c64 = arith.constant 64 : index
    %c0_66 = arith.constant 0 : index
    %163 = vector.load %arg12[%c64, %c0_66] : memref<288x512xbf16, #tpu.memory_space<vmem>>, vector<32x512xbf16>
    tpu.vector_store %arg12[%c64, %c0_66], %162 {strides = array<i32>} : memref<288x512xbf16, #tpu.memory_space<vmem>>, vector<32x512xbf16>,
    %c1_i32_67 = arith.constant 1 : i32
    %164 = tpu.dynamic_rotate %130 by %c1_i32_67 dim 1 : vector<32x512xf32>, i32 -> vector<32x512xf32>
    %cst_68 = arith.constant 1.000000e+00 : f32
    %165 = vector.broadcast %cst_68 : f32 to vector<1x512xf32>
    %166 = arith.cmpf oge, %9, %165 : vector<1x512xf32>
    %cst_69 = arith.constant 0.000000e+00 : f32
    %167 = vector.shape_cast %166 : vector<1x512xi1> to vector<1x512xi1>
    %168 = vector.broadcast %167 : vector<1x512xi1> to vector<32x512xi1>
    %169 = vector.broadcast %cst_69 : f32 to vector<32x512xf32>
    %170 = arith.select %168, %164, %169 : vector<32x512xi1>, vector<32x512xf32>
    %171 = arith.truncf %170 : vector<32x512xf32> to vector<32x512xbf16>
    %c96 = arith.constant 96 : index
    %c0_70 = arith.constant 0 : index
    %172 = vector.load %arg12[%c96, %c0_70] : memref<288x512xbf16, #tpu.memory_space<vmem>>, vector<32x512xbf16>
    tpu.vector_store %arg12[%c96, %c0_70], %171 {strides = array<i32>} : memref<288x512xbf16, #tpu.memory_space<vmem>>, vector<32x512xbf16>,
    %173 = arith.truncf %130 : vector<32x512xf32> to vector<32x512xbf16>
    %c128 = arith.constant 128 : index
    %c0_71 = arith.constant 0 : index
    %174 = vector.load %arg12[%c128, %c0_71] : memref<288x512xbf16, #tpu.memory_space<vmem>>, vector<32x512xbf16>
    tpu.vector_store %arg12[%c128, %c0_71], %173 {strides = array<i32>} : memref<288x512xbf16, #tpu.memory_space<vmem>>, vector<32x512xbf16>,
    %c511_i32_72 = arith.constant 511 : i32
    %175 = tpu.dynamic_rotate %130 by %c511_i32_72 dim 1 : vector<32x512xf32>, i32 -> vector<32x512xf32>
    %cst_73 = arith.constant 1.500000e+01 : f32
    %176 = vector.broadcast %cst_73 : f32 to vector<1x512xf32>
    %177 = arith.cmpf olt, %9, %176 : vector<1x512xf32>
    %cst_74 = arith.constant 0.000000e+00 : f32
    %178 = vector.shape_cast %177 : vector<1x512xi1> to vector<1x512xi1>
    %179 = vector.broadcast %178 : vector<1x512xi1> to vector<32x512xi1>
    %180 = vector.broadcast %cst_74 : f32 to vector<32x512xf32>
    %181 = arith.select %179, %175, %180 : vector<32x512xi1>, vector<32x512xf32>
    %182 = arith.truncf %181 : vector<32x512xf32> to vector<32x512xbf16>
    %c160 = arith.constant 160 : index
    %c0_75 = arith.constant 0 : index
    %183 = vector.load %arg12[%c160, %c0_75] : memref<288x512xbf16, #tpu.memory_space<vmem>>, vector<32x512xbf16>
    tpu.vector_store %arg12[%c160, %c0_75], %182 {strides = array<i32>} : memref<288x512xbf16, #tpu.memory_space<vmem>>, vector<32x512xbf16>,
    %c497_i32_76 = arith.constant 497 : i32
    %184 = tpu.dynamic_rotate %130 by %c497_i32_76 dim 1 : vector<32x512xf32>, i32 -> vector<32x512xf32>
    %cst_77 = arith.constant 1.500000e+01 : f32
    %185 = vector.broadcast %cst_77 : f32 to vector<1x512xf32>
    %186 = arith.cmpf olt, %17, %185 : vector<1x512xf32>
    %cst_78 = arith.constant 1.000000e+00 : f32
    %187 = vector.broadcast %cst_78 : f32 to vector<1x512xf32>
    %188 = arith.cmpf oge, %9, %187 : vector<1x512xf32>
    %189 = arith.andi %186, %188 : vector<1x512xi1>
    %cst_79 = arith.constant 0.000000e+00 : f32
    %190 = vector.shape_cast %189 : vector<1x512xi1> to vector<1x512xi1>
    %191 = vector.broadcast %190 : vector<1x512xi1> to vector<32x512xi1>
    %192 = vector.broadcast %cst_79 : f32 to vector<32x512xf32>
    %193 = arith.select %191, %184, %192 : vector<32x512xi1>, vector<32x512xf32>
    %194 = arith.truncf %193 : vector<32x512xf32> to vector<32x512xbf16>
    %c192 = arith.constant 192 : index
    %c0_80 = arith.constant 0 : index
    %195 = vector.load %arg12[%c192, %c0_80] : memref<288x512xbf16, #tpu.memory_space<vmem>>, vector<32x512xbf16>
    tpu.vector_store %arg12[%c192, %c0_80], %194 {strides = array<i32>} : memref<288x512xbf16, #tpu.memory_space<vmem>>, vector<32x512xbf16>,
    %c496_i32_81 = arith.constant 496 : i32
    %196 = tpu.dynamic_rotate %130 by %c496_i32_81 dim 1 : vector<32x512xf32>, i32 -> vector<32x512xf32>
    %cst_82 = arith.constant 1.500000e+01 : f32
    %197 = vector.broadcast %cst_82 : f32 to vector<1x512xf32>
    %198 = arith.cmpf olt, %17, %197 : vector<1x512xf32>
    %cst_83 = arith.constant 0.000000e+00 : f32
    %199 = vector.shape_cast %198 : vector<1x512xi1> to vector<1x512xi1>
    %200 = vector.broadcast %199 : vector<1x512xi1> to vector<32x512xi1>
    %201 = vector.broadcast %cst_83 : f32 to vector<32x512xf32>
    %202 = arith.select %200, %196, %201 : vector<32x512xi1>, vector<32x512xf32>
    %203 = arith.truncf %202 : vector<32x512xf32> to vector<32x512xbf16>
    %c224 = arith.constant 224 : index
    %c0_84 = arith.constant 0 : index
    %204 = vector.load %arg12[%c224, %c0_84] : memref<288x512xbf16, #tpu.memory_space<vmem>>, vector<32x512xbf16>
    tpu.vector_store %arg12[%c224, %c0_84], %203 {strides = array<i32>} : memref<288x512xbf16, #tpu.memory_space<vmem>>, vector<32x512xbf16>,
    %c495_i32_85 = arith.constant 495 : i32
    %205 = tpu.dynamic_rotate %130 by %c495_i32_85 dim 1 : vector<32x512xf32>, i32 -> vector<32x512xf32>
    %cst_86 = arith.constant 1.500000e+01 : f32
    %206 = vector.broadcast %cst_86 : f32 to vector<1x512xf32>
    %207 = arith.cmpf olt, %17, %206 : vector<1x512xf32>
    %cst_87 = arith.constant 1.500000e+01 : f32
    %208 = vector.broadcast %cst_87 : f32 to vector<1x512xf32>
    %209 = arith.cmpf olt, %9, %208 : vector<1x512xf32>
    %210 = arith.andi %207, %209 : vector<1x512xi1>
    %cst_88 = arith.constant 0.000000e+00 : f32
    %211 = vector.shape_cast %210 : vector<1x512xi1> to vector<1x512xi1>
    %212 = vector.broadcast %211 : vector<1x512xi1> to vector<32x512xi1>
    %213 = vector.broadcast %cst_88 : f32 to vector<32x512xf32>
    %214 = arith.select %212, %205, %213 : vector<32x512xi1>, vector<32x512xf32>
    %215 = arith.truncf %214 : vector<32x512xf32> to vector<32x512xbf16>
    %c256 = arith.constant 256 : index
    %c0_89 = arith.constant 0 : index
    %216 = vector.load %arg12[%c256, %c0_89] : memref<288x512xbf16, #tpu.memory_space<vmem>>, vector<32x512xbf16>
    tpu.vector_store %arg12[%c256, %c0_89], %215 {strides = array<i32>} : memref<288x512xbf16, #tpu.memory_space<vmem>>, vector<32x512xbf16>,
    %c0_90 = arith.constant 0 : index
    %c0_91 = arith.constant 0 : index
    %217 = vector.load %arg5[%c0_90, %c0_91] : memref<16x288xbf16, #tpu.memory_space<vmem>>, vector<16x288xbf16>
    %c0_92 = arith.constant 0 : index
    %c0_93 = arith.constant 0 : index
    %218 = vector.load %arg12[%c0_92, %c0_93] : memref<288x512xbf16, #tpu.memory_space<vmem>>, vector<288x512xbf16>
    %cst_94 = arith.constant dense<0.000000e+00> : vector<16x512xf32>
    %219 = tpu.matmul %217, %218, %cst_94 {dimension_numbers = #tpu.dot_dimension_numbers<[1], [0], [0], [1], [0, 0, 1, 1], [], []>} : vector<16x288xbf16>, vector<288x512xbf16>, vector<16x512xf32> -> vector<16x512xf32>
    %cst_95 = arith.constant dense<0.000000e+00> : vector<16xf32>
    %220 = vector.multi_reduction <add>, %219, %cst_95 [1] : vector<16x512xf32> to vector<16xf32>
    %221 = vector.shape_cast %220 : vector<16xf32> to vector<16x1xf32>
    %cst_96 = arith.constant 0.001953125 : f32
    %222 = vector.broadcast %cst_96 : f32 to vector<16x1xf32>
    %223 = arith.mulf %221, %222 : vector<16x1xf32>
    %224 = vector.broadcast %223 : vector<16x1xf32> to vector<16x512xf32>
    %225 = arith.subf %219, %224 : vector<16x512xf32>
    %226 = arith.mulf %225, %225 : vector<16x512xf32>
    %cst_97 = arith.constant dense<0.000000e+00> : vector<16xf32>
    %227 = vector.multi_reduction <add>, %226, %cst_97 [1] : vector<16x512xf32> to vector<16xf32>
    %228 = vector.shape_cast %227 : vector<16xf32> to vector<16x1xf32>
    %cst_98 = arith.constant 0.001953125 : f32
    %229 = vector.broadcast %cst_98 : f32 to vector<16x1xf32>
    %230 = arith.mulf %228, %229 : vector<16x1xf32>
    %c0_99 = arith.constant 0 : index
    %c0_100 = arith.constant 0 : index
    %231 = vector.load %arg6[%c0_99, %c0_100] : memref<16x1xf32, #tpu.memory_space<vmem>>, vector<16x1xf32>
    %cst_101 = arith.constant 9.99999974E-6 : f32
    %232 = vector.broadcast %cst_101 : f32 to vector<16x1xf32>
    %233 = arith.addf %230, %232 : vector<16x1xf32>
    %234 = math.rsqrt %233 : vector<16x1xf32>
    %235 = arith.mulf %231, %234 : vector<16x1xf32>
    %236 = vector.broadcast %235 : vector<16x1xf32> to vector<16x512xf32>
    %237 = arith.mulf %225, %236 : vector<16x512xf32>
    %c0_102 = arith.constant 0 : index
    %c0_103 = arith.constant 0 : index
    %238 = vector.load %arg7[%c0_102, %c0_103] : memref<16x1xf32, #tpu.memory_space<vmem>>, vector<16x1xf32>
    %239 = vector.broadcast %238 : vector<16x1xf32> to vector<16x512xf32>
    %240 = arith.addf %237, %239 : vector<16x512xf32>
    %cst_104 = arith.constant 0.000000e+00 : f32
    %241 = vector.broadcast %cst_104 : f32 to vector<16x512xf32>
    %242 = arith.maximumf %240, %241 : vector<16x512xf32>
    %c0_105 = arith.constant 0 : index
    %c0_106 = arith.constant 0 : index
    %243 = vector.load %arg8[%c0_105, %c0_106] : memref<16x1xf32, #tpu.memory_space<vmem>>, vector<16x1xf32>
    %244 = vector.broadcast %243 : vector<16x1xf32> to vector<16x512xf32>
    %245 = arith.mulf %242, %244 : vector<16x512xf32>
    %cst_107 = arith.constant dense<0.000000e+00> : vector<512xf32>
    %246 = vector.multi_reduction <add>, %245, %cst_107 [0] : vector<16x512xf32> to vector<512xf32>
    %247 = vector.shape_cast %246 : vector<512xf32> to vector<1x512xf32>
    %c0_108 = arith.constant 0 : index
    %c0_109 = arith.constant 0 : index
    %248 = vector.load %arg9[%c0_108, %c0_109] : memref<1x1xf32, #tpu.memory_space<vmem>>, vector<1x1xf32>
    %249 = vector.broadcast %248 : vector<1x1xf32> to vector<1x512xf32>
    %250 = arith.addf %247, %249 : vector<1x512xf32>
    %cst_110 = arith.constant 0.000000e+00 : f32
    %251 = vector.broadcast %cst_110 : f32 to vector<1x512xf32>
    %252 = arith.subf %251, %250 : vector<1x512xf32>
    %253 = math.exp %252 : vector<1x512xf32>
    %cst_111 = arith.constant 1.000000e+00 : f32
    %254 = vector.broadcast %cst_111 : f32 to vector<1x512xf32>
    %255 = arith.addf %254, %253 : vector<1x512xf32>
    %256 = tpu.reciprocal %255 {approx = true} : vector<1x512xf32> -> vector<1x512xf32>
    %c0_112 = arith.constant 0 : index
    %c0_113 = arith.constant 0 : index
    %257 = vector.load %arg10[%c0_112, %c0_113] : memref<1x512xf32, #tpu.memory_space<vmem>>, vector<1x512xf32>
    tpu.vector_store %arg10[%c0_112, %c0_113], %256 {strides = array<i32>} : memref<1x512xf32, #tpu.memory_space<vmem>>, vector<1x512xf32>,
    return
  }
  func.func @transform_0(%arg0: i32) -> (i32, i32) {
    %c0_i32 = arith.constant 0 : i32
    %c0_i32_0 = arith.constant 0 : i32
    %c0_i32_1 = arith.constant 0 : i32
    return %c0_i32, %c0_i32_0 : i32, i32
  }
  func.func @transform_1(%arg0: i32) -> (i32, i32) {
    %c0_i32 = arith.constant 0 : i32
    %c0_i32_0 = arith.constant 0 : i32
    %c0_i32_1 = arith.constant 0 : i32
    return %c0_i32, %c0_i32_0 : i32, i32
  }
  func.func @transform_2(%arg0: i32) -> (i32, i32) {
    %c0_i32 = arith.constant 0 : i32
    %c0_i32_0 = arith.constant 0 : i32
    %c0_i32_1 = arith.constant 0 : i32
    return %c0_i32, %c0_i32_0 : i32, i32
  }
  func.func @transform_3(%arg0: i32) -> (i32, i32) {
    %c0_i32 = arith.constant 0 : i32
    %c0_i32_0 = arith.constant 0 : i32
    %c0_i32_1 = arith.constant 0 : i32
    return %c0_i32, %c0_i32_0 : i32, i32
  }
  func.func @transform_4(%arg0: i32) -> (i32, i32) {
    %c0_i32 = arith.constant 0 : i32
    %c0_i32_0 = arith.constant 0 : i32
    %c0_i32_1 = arith.constant 0 : i32
    return %c0_i32, %c0_i32_0 : i32, i32
  }
  func.func @transform_5(%arg0: i32) -> (i32, i32) {
    %c0_i32 = arith.constant 0 : i32
    %c0_i32_0 = arith.constant 0 : i32
    %c0_i32_1 = arith.constant 0 : i32
    return %c0_i32, %c0_i32_0 : i32, i32
  }
  func.func @transform_6(%arg0: i32) -> (i32, i32) {
    %c0_i32 = arith.constant 0 : i32
    %c0_i32_0 = arith.constant 0 : i32
    %c0_i32_1 = arith.constant 0 : i32
    return %c0_i32, %c0_i32_0 : i32, i32
  }
  func.func @transform_7(%arg0: i32) -> (i32, i32) {
    %c0_i32 = arith.constant 0 : i32
    %c0_i32_0 = arith.constant 0 : i32
    %c0_i32_1 = arith.constant 0 : i32
    return %c0_i32, %c0_i32_0 : i32, i32
  }
  func.func @transform_8(%arg0: i32) -> (i32, i32) {
    %c0_i32 = arith.constant 0 : i32
    %c0_i32_0 = arith.constant 0 : i32
    %c0_i32_1 = arith.constant 0 : i32
    return %c0_i32, %c0_i32_0 : i32, i32
  }
  func.func @transform_9(%arg0: i32) -> (i32, i32) {
    %c0_i32 = arith.constant 0 : i32
    %c0_i32_0 = arith.constant 0 : i32
    %c0_i32_1 = arith.constant 0 : i32
    return %c0_i32, %c0_i32_0 : i32, i32
  }
}

</mosaic_0001>

<bundles_post_ra>
// kernel: error_prediction_forward.1
= control target key start
LH: loop header
LB: loop body
LE: loop exit
PB: predicated region body
PF: predicated region fallthrough
CT: control target
= control target key end

     0   :  { %s3726_s13 = smov 127   ;;  %s3727_s14 = smov 111   ;;  %v5616_v9 = vmov 0   ;;  %v5614_v10 = vlaneseq  ;;  %s5575_s0 = inlined_call_operand.vmem [shape: f32[4,512], index: 0, kind: input, shape index: {}]   ;;  %s5576_s1 = inlined_call_operand.vmem [shape: bf16[32,36], index: 1, kind: input, shape index: {}]   ;;  %s5577_s3 = inlined_call_operand.vmem [shape: f32[32,1], index: 3, kind: input, shape index: {}]   ;;  %s5578_s2 = inlined_call_operand.vmem [shape: f32[32,1], index: 2, kind: input, shape index: {}]   ;;  %s5579_s4 = inlined_call_operand.vmem [shape: bf16[16,288], index: 4, kind: input, shape index: {}]   ;;  %s5580_s8 = inlined_call_operand.<no memory space> [shape: f32[1,1], index: 8, kind: input, shape index: {}]   ;;  %s5581_s5 = inlined_call_operand.vmem [shape: f32[16,1], index: 5, kind: input, shape index: {}]   ;;  %s5582_s6 = inlined_call_operand.vmem [shape: f32[16,1], index: 6, kind: input, shape index: {}]   ;;  %s5583_s7 = inlined_call_operand.vmem [shape: f32[16,1], index: 7, kind: input, shape index: {}]   ;;  %s5584_s9 = inlined_call_operand.vmem [shape: f32[1,512], index: 9, kind: output, shape index: {}]  }
   0x1   :  { %v84_v0 = vld [vmem:[%s5575_s0] sm:$0xff]  ;;  %v85_v1 = vld [vmem:[%s5575_s0 + $0x8] sm:$0xff]  ;;  %s3728_s15 = smov 112   ;;  %s3729_s0 = smov 113   ;;  %620 = vmatprep.mubr.bf16.mxu0 %v5616_v9  ;;  %673 = vmatprep.mubr.bf16.mxu1 %v5616_v9 }
   0x2   :  { %v88_v2 = vcombine.high %v84_v0, %v84_v0  ;;  %v89_v3 = vcombine.high %v85_v1, %v85_v1  ;;  %s3730_s16 = smov 16   ;;  %s3731_s17 = smov 1   ;;  %3356 = vset.pattern.permute.xlu1 %v5616_v9  ;;  %3355 = vset.pattern.permute.xlu0 %v5616_v9  ;;  %v3816_v11 = vand.u32 127, %v5614_v10 }
   0x3   :  { %s3732_s18 = smov 17   ;;  %s3733_s19 = smov 15  }
   0x4   :  { %v3300_v4 = vpack.i.bf16 %v88_v2, %v84_v0  ;;  %v3305_v5 = vpack.i.bf16 %v89_v3, %v85_v1  ;;  %v2934_v6 = vpack.c.bf16 %v88_v2, %v84_v0  ;;  %v2935_v7 = vpack.c.bf16 %v89_v3, %v85_v1 }
   0x5   :  { %v3335_v8 = vpack.i.bf16 %v85_v1, %v89_v3  ;;  %v37_v12 = vadd.s32 128, %v3816_v11  ;;  %v38_v13 = vadd.s32 256, %v3816_v11  ;;  %v40_v14 = vcvt.s32.f32 %v3816_v11 }
   0x6   :  { %3301 = vrot.lane.b32.xlu1 %v3300_v4, %s3726_s13  ;;  %3291 = vrot.lane.b32.xlu0 %v3300_v4, %s3727_s14  ;;  %304 = vst [vmem:[#allocation2 + $0x48] sm:$0x33] %v2934_v6  ;;  %305 = vst [vmem:[#allocation2 + $0x28] sm:$0x33] %v2935_v7  ;;  %v39_v15 = vadd.s32 384, %v3816_v11  ;;  %vm5588_vm0 = vcmp.lt.s32.totalorder %v3816_v11, 127 }
   0x7   :  { %v41_v16 = vcvt.s32.f32 %v37_v12  ;;  %v42_v17 = vcvt.s32.f32 %v38_v13  ;;  %v44_v18 = vadd.f32 0.5, %v40_v14  ;;  %vm5590_vm1 = vcmp.lt.s32.totalorder %v3816_v11, 111 }
   0x8   :  { %v43_v19 = vcvt.s32.f32 %v39_v15  ;;  %vm5595_vm6 = vcmp.lt.s32.totalorder %v3816_v11, 112 }
   0x9   :  { %v45_v20 = vadd.f32 0.5, %v41_v16  ;;  %v46_v21 = vadd.f32 0.5, %v42_v17  ;;  %v48_v22 = vmul.f32 0.0625, %v44_v18 }
   0xa   :  { %3306 = vrot.lane.b32.xlu1 %v3305_v5, %s3726_s13  ;;  %3296 = vrot.lane.b32.xlu0 %v3305_v5, %s3727_s14  ;;  %v47_v23 = vadd.f32 0.5, %v43_v19 }
   0xb   :  { %v49_v24 = vmul.f32 0.0625, %v45_v20  ;;  %v50_v25 = vmul.f32 0.0625, %v46_v21  ;;  %v52_v26 = vfloor.f32 %v48_v22  ;;  %v5683_v20 = vmov 0 }
   0xc   :  { %v51_v27 = vmul.f32 0.0625, %v47_v23 }
   0xd   :  { %v53_v28 = vfloor.f32 %v49_v24  ;;  %v54_v29 = vfloor.f32 %v50_v25  ;;  %v64_v30 = vadd.f32 0.5, %v52_v26  ;;  %v56_v42 = vmul.f32 16.0, %v52_v26 }
   0xe   :  { %3316 = vrot.lane.b32.xlu1 %v3305_v5, %s3728_s15  ;;  %3311 = vrot.lane.b32.xlu0 %v3300_v4, %s3728_s15  ;;  %v55_v31 = vfloor.f32 %v51_v27 }
   0xf   :  { %v65_v32 = vadd.f32 0.5, %v53_v28  ;;  %v66_v33 = vadd.f32 0.5, %v54_v29  ;;  %v68_v34 = vmul.f32 0.0625, %v64_v30  ;;  %v57_v45 = vmul.f32 16.0, %v53_v28 }
  0x10   :  { %v67_v35 = vadd.f32 0.5, %v55_v31  ;;  %v58_v47 = vmul.f32 16.0, %v54_v29  ;;  %v3822_v49 = vsub.f32 %v40_v14, %v56_v42  ;;  %v59_v51 = vmul.f32 16.0, %v55_v31 }
  0x11   :  { %v69_v36 = vmul.f32 0.0625, %v65_v32  ;;  %v70_v37 = vmul.f32 0.0625, %v66_v33  ;;  %v72_v38 = vfloor.f32 %v68_v34  ;;  %v3826_v53 = vsub.f32 %v41_v16, %v57_v45 }
  0x12   :  { %3326 = vrot.lane.b32.xlu1 %v3305_v5, %s3729_s0  ;;  %3321 = vrot.lane.b32.xlu0 %v3300_v4, %s3729_s0  ;;  %v71_v39 = vmul.f32 0.0625, %v67_v35  ;;  %5672 = vst [vmem:[#allocation5_spill] sm:$0xff] %v3822_v49  ;;  %v3832_v55 = vsub.f32 %v42_v17, %v58_v47  ;;  %vm5587_vm2 = vcmp.lt.f32.partialorder %v3822_v49, 15.0  ;;  %v3838_v59 = vsub.f32 %v43_v19, %v59_v51 }
  0x13   :  { %v73_v40 = vfloor.f32 %v69_v36  ;;  %v74_v41 = vfloor.f32 %v70_v37  ;;  %v76_v43 = vmul.f32 16.0, %v72_v38  ;;  %5673 = vst [vmem:[#allocation6_spill] sm:$0xff] %v3826_v53  ;;  %vm5592_vm4 = vcmp.lt.f32.partialorder %v3826_v53, 15.0 }
  0x14   :  { %v75_v44 = vfloor.f32 %v71_v39  ;;  %vm5591_vm8 = vcmp.lt.f32.partialorder %v3832_v55, 15.0  ;;  %vm5589_vm10 = vcmp.lt.f32.partialorder %v3838_v59, 15.0  ;;  %vm5593_vm12 = vcmp.ge.f32.partialorder %v3832_v55, 1.0 }
  0x15   :  { %v77_v46 = vmul.f32 16.0, %v73_v40  ;;  %v78_v48 = vmul.f32 16.0, %v74_v41  ;;  %v3824_v50 = vsub.f32 %v52_v26, %v76_v43  ;;  %vm5601_vm15 = vcmp.ge.f32.partialorder %v3822_v49, 1.0 }
  0x16   :  { %3336 = vrot.lane.b32.xlu1 %v3335_v8, %s3730_s16  ;;  %3331 = vrot.lane.b32.xlu0 %v3300_v4, %s3730_s16  ;;  %v79_v52 = vmul.f32 16.0, %v75_v44  ;;  %v5680_v16 = vmov 0  ;;  %v5686_v45 = vmov 0 }
  0x17   :  { %v3828_v54 = vsub.f32 %v53_v28, %v77_v46  ;;  %v3834_v56 = vsub.f32 %v54_v29, %v78_v48  ;;  %vm5585_vm3 = vcmp.lt.f32.partialorder %v3824_v50, 15.0 }
  0x18   :  { %v3840_v60 = vsub.f32 %v55_v31, %v79_v52  ;;  %vm3851_vm7 = vmand %vm5585_vm3, %vm5587_vm2  ;;  %vm5602_vm3 = vcmp.ge.f32.partialorder %v3826_v53, 1.0 }
  0x19   :  { %5674 = vst [vmem:[#allocation7_spill] sm:$0xff] %v3834_v56  ;;  %vm5586_vm5 = vcmp.lt.f32.partialorder %v3828_v54, 15.0  ;;  %vm5594_vm9 = vcmp.lt.f32.partialorder %v3834_v56, 15.0 }
  0x1a   :  { %249 = vrot.lane.b32.xlu1 %v89_v3, %s3731_s17  ;;  %3341 = vrot.lane.b32.xlu0 %v3300_v4, %s3731_s17  ;;  %5675 = vst [vmem:[#allocation8_spill] sm:$0xff] %v3840_v60  ;;  %vm5596_vm11 = vcmp.lt.f32.partialorder %v3840_v60, 15.0  ;;  %vm3867_vm14 = vmand %vm5586_vm5, %vm5592_vm4  ;;  %vm5597_vm5 = vcmp.ge.f32.partialorder %v3838_v59, 1.0 }
  0x1b   :  { %vm3880_vm13 = vmand %vm5594_vm9, %vm5591_vm8 }
  0x1c   :  { %v5681_v16 = vsel %vm3880_vm13, 4294967295, %v5680_v16 }
  0x1d   :  { %5682 = vst [vmem:[#allocation9_spill] sm:$0xff] %v5681_v16 }
  0x1e   :  { %98 = vrot.lane.b32.xlu1 %v89_v3, %s3732_s18  ;;  %3346 = vrot.lane.b32.xlu0 %v3300_v4, %s3732_s18 }
  0x22   :  { %198 = vrot.lane.b32.xlu1 %v89_v3, %s3733_s19  ;;  %3351 = vrot.lane.b32.xlu0 %v3300_v4, %s3733_s19 }
  0x26   :  { %96 = vrot.lane.b32.xlu1 %v85_v1, %s3732_s18  ;;  %247 = vrot.lane.b32.xlu0 %v85_v1, %s3731_s17 }
  0x2a   :  { %196 = vrot.lane.b32.xlu0 %v85_v1, %s3733_s19 }
  0x78   :  { %v3302_v57 = vpop.permute.xlu1 %3301  ;;  %v3292_v58 = vpop.permute.xlu0 %3291 }
  0x79   :  { %v3304_v61 = vunpack.i.h.bf16 %v3302_v57  ;;  %v3303_v62 = vunpack.i.l.bf16 %v3302_v57  ;;  %v3294_v63 = vunpack.i.h.bf16 %v3292_v58  ;;  %v3293_v0 = vunpack.i.l.bf16 %v3292_v58 }
  0x7b   :  { %v317_v1 = vsel %vm5588_vm0, %v3303_v62, %v3304_v61  ;;  %v458_v3 = vsel %vm5590_vm1, %v3293_v0, %v3294_v63 }
  0x7c   :  { %v3307_v4 = vpop.permute.xlu1 %3306  ;;  %v3297_v5 = vpop.permute.xlu0 %3296  ;;  %v327_v14 = vsel %vm5587_vm2, %v317_v1, 0.0  ;;  %v472_v15 = vsel %vm3851_vm7, %v458_v3, 0.0  ;;  %vm3896_vm2 = vmand %vm5596_vm11, %vm5589_vm10 }
  0x7d   :  { %v3309_v6 = vunpack.i.h.bf16 %v3307_v4  ;;  %v3308_v7 = vunpack.i.l.bf16 %v3307_v4  ;;  %v3299_v12 = vunpack.i.h.bf16 %v3297_v5  ;;  %v3298_v13 = vunpack.i.l.bf16 %v3297_v5 }
  0x7e   :  { %v5684_v20 = vsel %vm3896_vm2, 4294967295, %v5683_v20 }
  0x7f   :  { %v315_v17 = vsel %vm5588_vm0, %v3308_v7, %v3309_v6  ;;  %v316_v18 = vsel %vm5588_vm0, %v3304_v61, %v3308_v7  ;;  %v318_v19 = vsel %vm5588_vm0, %v3309_v6, %v3303_v62  ;;  %5685 = vst [vmem:[#allocation10_spill] sm:$0xff] %v5684_v20  ;;  %v456_v21 = vsel %vm5590_vm1, %v3298_v13, %v3299_v12 }
  0x80   :  { %v328_v22 = vsel %vm5592_vm4, %v316_v18, 0.0  ;;  %v329_v23 = vsel %vm5591_vm8, %v315_v17, 0.0  ;;  %v330_v24 = vsel %vm5589_vm10, %v318_v19, 0.0  ;;  %v457_v25 = vsel %vm5590_vm1, %v3294_v63, %v3298_v13  ;;  %v3317_v26 = vpop.permute.xlu1 %3316  ;;  %v3312_v27 = vpop.permute.xlu0 %3311  ;;  %vm3928_vm4 = vmand %vm5594_vm9, %vm5593_vm12 }
  0x81   :  { %vm5598_vm0 = vcmp.lt.s32.totalorder %v3816_v11, 16  ;;  %v2936_v28 = vpack.c.bf16 %v328_v22, %v327_v14  ;;  %v2937_v29 = vpack.c.bf16 %v330_v24, %v329_v23  ;;  %v459_v30 = vsel %vm5590_vm1, %v3299_v12, %v3293_v0 }
  0x82   :  { %v473_v31 = vsel %vm3867_vm14, %v457_v25, 0.0  ;;  %v474_v32 = vsel %vm3880_vm13, %v456_v21, 0.0  ;;  %v475_v33 = vsel %vm3896_vm2, %v459_v30, 0.0  ;;  %v3319_v35 = vunpack.i.h.bf16 %v3317_v26 }
  0x83   :  { %v2942_v34 = vpack.c.bf16 %v473_v31, %v472_v15  ;;  %v345_v36 = vrot.slane %v2936_v28, 6  ;;  %v346_v37 = vrot.slane %v2937_v29, 6  ;;  %v2943_v38 = vpack.c.bf16 %v475_v33, %v474_v32 }
  0x84   :  { %v3318_v39 = vunpack.i.l.bf16 %v3317_v26  ;;  %v3314_v40 = vunpack.i.h.bf16 %v3312_v27  ;;  %v3313_v41 = vunpack.i.l.bf16 %v3312_v27  ;;  %v3327_v42 = vpop.permute.xlu1 %3326  ;;  %v3322_v43 = vpop.permute.xlu0 %3321  ;;  %v5687_v45 = vsel %vm3928_vm4, 4294967295, %v5686_v45 }
  0x85   :  { %492 = vst [vmem:[#allocation2 + $0x40] sm:$0x33] %v2942_v34  ;;  %349 = vst [vmem:[#allocation2 + $0x48] sm:$0xcc] %v345_v36  ;;  %v3329_v46 = vunpack.i.h.bf16 %v3327_v42  ;;  %v3328_v47 = vunpack.i.l.bf16 %v3327_v42  ;;  %v3324_v48 = vunpack.i.h.bf16 %v3322_v43  ;;  %vm5689_vm12 = vcmp.lt.f32.partialorder %v3828_v54, 15.0 }
  0x86   :  { %350 = vst [vmem:[#allocation2 + $0x28] sm:$0xcc] %v346_v37  ;;  %493 = vst [vmem:[#allocation2 + $0x38] sm:$0x33] %v2943_v38  ;;  %v411_v44 = vsel %vm5595_vm6, %v3318_v39, %v3319_v35  ;;  %v412_v52 = vsel %vm5595_vm6, %v3314_v40, %v3318_v39  ;;  %v413_v57 = vsel %vm5595_vm6, %v3313_v41, %v3314_v40  ;;  %v5690_v61 = vmov 0 }
  0x87   :  { %5688 = vst [vmem:[#allocation11_spill] sm:$0xff] %v5687_v45  ;;  %v425_v51 = vsel %vm5594_vm9, %v411_v44, 0.0  ;;  %v414_v58 = vsel %vm5595_vm6, %v3319_v35, %v3313_v41  ;;  %vm3945_vm10 = vmand %vm5689_vm12, %vm5602_vm3  ;;  %vm5694_vm8 = vcmp.lt.f32.partialorder %v3824_v50, 15.0  ;;  %vm5695_vm6 = vcmp.lt.s32.totalorder %v3816_v11, 113 }
  0x88   :  { %v5691_v61 = vsel %vm3945_vm10, 4294967295, %v5690_v61  ;;  %vm5693_vm9 = vmmov %vm5689_vm12  ;;  %v423_v63 = vsel %vm5694_vm8, %v413_v57, 0.0  ;;  %v426_v0 = vsel %vm5596_vm11, %v414_v58, 0.0  ;;  %v360_v1 = vsel %vm5695_vm6, %v3328_v47, %v3329_v46  ;;  %v3337_v12 = vpop.permute.xlu1 %3336  ;;  %v3332_v13 = vpop.permute.xlu0 %3331 }
  0x89   :  { %5692 = vst [vmem:[#allocation12_spill] sm:$0xff] %v5691_v61  ;;  %v424_v62 = vsel %vm5693_vm9, %v412_v52, 0.0  ;;  %v2941_v4 = vpack.c.bf16 %v426_v0, %v425_v51  ;;  %v382_v5 = vsel %vm3928_vm4, %v360_v1, 0.0  ;;  %vm5696_vm12 = vmmov %vm5694_vm8  ;;  %v5697_v6 = vmov 0 }
  0x8a   :  { %v2940_v3 = vpack.c.bf16 %v424_v62, %v423_v63  ;;  %vm3963_vm1 = vmand %vm5696_vm12, %vm5601_vm15  ;;  %v5701_v14 = vmov 0  ;;  %v3323_v17 = vunpack.i.l.bf16 %v3322_v43  ;;  %v3339_v18 = vunpack.i.h.bf16 %v3337_v12 }
  0x8b   :  { %v5698_v6 = vsel %vm3963_vm1, 4294967295, %v5697_v6  ;;  %vm5700_vm8 = vmmov %vm5695_vm6  ;;  %v3338_v19 = vunpack.i.l.bf16 %v3337_v12  ;;  %v442_v22 = vrot.slane %v2941_v4, 6  ;;  %v3334_v23 = vunpack.i.h.bf16 %v3332_v13 }
  0x8c   :  { %5699 = vst [vmem:[#allocation13_spill] sm:$0xff] %v5698_v6  ;;  %v361_v7 = vsel %vm5700_vm8, %v3324_v48, %v3328_v47  ;;  %vm3973_vm6 = vmand %vm5596_vm11, %vm5597_vm5  ;;  %v441_v21 = vrot.slane %v2940_v3, 6  ;;  %v3333_v24 = vunpack.i.l.bf16 %v3332_v13  ;;  %v363_v26 = vsel %vm5700_vm8, %v3329_v46, %v3323_v17  ;;  %v506_v28 = vld [vmem:[#allocation2 + $0x40] sm:$0x33]  ;;  %v3995_v33 = vpop.permute.xlu1 %249  ;;  %v3997_v34 = vpop.permute.xlu0 %3341 }
  0x8d   :  { %v5702_v14 = vsel %vm3973_vm6, 4294967295, %v5701_v14  ;;  %v381_v15 = vsel %vm3945_vm10, %v361_v7, 0.0  ;;  %vm5704_vm12 = vmmov %vm5700_vm8  ;;  %v156_v27 = vsel %vm5598_vm0, %v3339_v18, %v3338_v19  ;;  %vm5599_vm11 = vcmp.ge.f32.partialorder %v3840_v60, 1.0  ;;  %446 = vst [vmem:[#allocation2 + $0x20] sm:$0xcc] %v442_v22 }
  0x8e   :  { %5703 = vst [vmem:[#allocation14_spill] sm:$0xff] %v5702_v14  ;;  %v362_v25 = vsel %vm5704_vm12, %v3323_v17, %v3324_v48  ;;  %445 = vst [vmem:[#allocation2 + $0x8] sm:$0xcc] %v441_v21  ;;  %v383_v30 = vsel %vm3973_vm6, %v363_v26, 0.0  ;;  %v157_v31 = vsel %vm5598_vm0, %v3334_v23, %v3339_v18  ;;  %v158_v32 = vsel %vm5598_vm0, %v3333_v24, %v3334_v23  ;;  %v507_v35 = vld [vmem:[#allocation2 + $0x38] sm:$0x33] }
  0x8f   :  { %v380_v29 = vsel %vm3963_vm1, %v362_v25, 0.0  ;;  %v2939_v37 = vpack.c.bf16 %v383_v30, %v382_v5  ;;  %vm5705_vm12 = vcmp.ge.f32.partialorder %v3834_v56, 1.0  ;;  %v159_v39 = vsel %vm5598_vm0, %v3338_v19, %v3333_v24 }
  0x90   :  { %v2938_v36 = vpack.c.bf16 %v381_v15, %v380_v29  ;;  %v170_v38 = vsel %vm5705_vm12, %v157_v31, 0.0  ;;  %vm5706_vm8 = vcmp.ge.f32.partialorder %v3824_v50, 1.0  ;;  %vm5707_vm5 = vcmp.ge.f32.partialorder %v3828_v54, 1.0  ;;  %v99_v58 = vpop.permute.xlu1 %98  ;;  %v3347_v62 = vpop.permute.xlu0 %3346  ;;  %v502_v31 = vld [vmem:[#allocation2 + $0x48] sm:$0xff] }
  0x91   :  { %v168_v40 = vsel %vm5706_vm8, %v159_v39, 0.0  ;;  %v169_v41 = vsel %vm5707_vm5, %v158_v32, 0.0  ;;  %v3344_v42 = vunpack.i.h.bf16 %v3997_v34  ;;  %v3343_v43 = vunpack.i.l.bf16 %v3997_v34  ;;  %401 = vst [vmem:[#allocation2 + $0x20] sm:$0x33] %v2939_v37  ;;  %v5899_v34 = vld [vmem:[#allocation8_spill] sm:$0xff] }
  0x92   :  { %400 = vst [vmem:[#allocation2 + $0x8] sm:$0x33] %v2938_v36  ;;  %v2928_v44 = vpack.c.bf16 %v169_v41, %v168_v40  ;;  %v2768_v46 = vcombine.high %v506_v28, %v506_v28  ;;  %v2770_v47 = vcombine.high %v507_v35, %v507_v35  ;;  %v2767_v48 = vcombine.low %v506_v28, %v506_v28 }
  0x93   :  { %vm5708_vm12 = vcmp.lt.s32.totalorder %v3816_v11, 1  ;;  %v2769_v57 = vcombine.low %v507_v35, %v507_v35  ;;  %v171_v63 = vsel %vm5599_vm11, %v156_v27, 0.0  ;;  %vm5710_vm5 = vcmask 1041408  }
  0x94   :  { %v254_v51 = vsel %vm5708_vm12, %v3343_v43, %v3344_v42  ;;  %vm5709_vm8 = vmmov %vm5708_vm12  ;;  %v186_v0 = vrot.slane %v2928_v44, 6  ;;  %2771 = vmatprep.subr.msk.bf16.mxu0 %vm5710_vm5, %v2768_v46  ;;  %v5714_v5 = vmov 0  ;;  %v5719_v13 = vmov 0  ;;  %v199_v24 = vpop.permute.xlu1 %198  ;;  %v3352_v26 = vpop.permute.xlu0 %3351 }
  0x95   :  { %v255_v52 = vsel %vm5709_vm8, %v3995_v33, %v3343_v43  ;;  %v265_v3 = vsel %vm5602_vm3, %v254_v51, 0.0  ;;  %vm5711_vm12 = vmmov %vm5710_vm5  ;;  %vm5713_vm8 = vcmp.ge.f32.partialorder %v3824_v50, 1.0  ;;  %v3349_v15 = vunpack.i.h.bf16 %v3347_v62 }
  0x96   :  { %v264_v1 = vsel %vm5601_vm15, %v255_v52, 0.0  ;;  %2774 = vmatprep.subr.msk.bf16.mxu1 %vm5711_vm12, %v2770_v47  ;;  %vm5712_vm0 = vmmov %vm5710_vm5  ;;  %vm5718_vm5 = vcmp.ge.f32.partialorder %v3828_v54, 1.0  ;;  %v3348_v17 = vunpack.i.l.bf16 %v3347_v62  ;;  %190 = vst [vmem:[#allocation2 + $0x30] sm:$0xcc] %v186_v0  ;;  %v2929_v19 = vpack.c.bf16 %v171_v63, %v170_v38 }
  0x97   :  { %v577_v4 = vsel %vm5712_vm0, %v2767_v48, 0  ;;  %vm4029_vm9 = vmand %vm5713_vm8, %vm5601_vm15  ;;  %v2932_v7 = vpack.c.bf16 %v265_v3, %v264_v1  ;;  %vm5607_vm15 = vcmp.lt.s32.totalorder %v3816_v11, 15  ;;  %vm5729_vm2 = vcmp.ge.f32.partialorder %v3828_v54, 1.0 }
  0x98   :  { %v5715_v5 = vsel %vm4029_vm9, 4294967295, %v5714_v5  ;;  %599 = vmatpush1.bf16.msra.mxu0 %v577_v4  ;;  %vm5717_vm11 = vmmov %vm5712_vm0  ;;  %vm5722_vm0 = vcmp.lt.f32.partialorder %v3822_v49, 15.0  ;;  %v3354_v29 = vunpack.i.h.bf16 %v3352_v26  ;;  %v3353_v30 = vunpack.i.l.bf16 %v3352_v26  ;;  %v3683_v37 = vld [vmem:[#allocation2 + $0x2c] ss:$-8 sps:$4 sm:$0xff]   ;;  %v3685_v44 = vld [vmem:[#allocation2 + $0x28] ss:$-8 sps:$4 sm:$0xff]   ;;  %v97_v51 = vpop.permute.xlu1 %96  ;;  %v248_v52 = vpop.permute.xlu0 %247 }
  0x99   :  { %5716 = vst [vmem:[#allocation15_spill] sm:$0xff] %v5715_v5  ;;  %v583_v12 = vsel %vm5717_vm11, %v2769_v57, 0  ;;  %vm4038_vm13 = vmand %vm5718_vm5, %vm5602_vm3  ;;  %v282_v21 = vrot.slane %v2932_v7, 6  ;;  %vm5726_vm11 = vcmp.lt.s32.totalorder %v3816_v11, 17  ;;  %vm5728_vm3 = vcmp.lt.f32.partialorder %v3826_v53, 15.0  ;;  %v504_v36 = vld [vmem:[#allocation2 + $0x8] sm:$0xff] }
  0x9a   :  { %v5720_v13 = vsel %vm4038_vm13, 4294967295, %v5719_v13  ;;  %652 = vmatpush1.bf16.msra.mxu1 %v583_v12  ;;  %vm5723_vm12 = vmmov %vm5713_vm8  ;;  %v103_v22 = vsel %vm5726_vm11, %v3348_v17, %v3349_v15  ;;  %v5734_v32 = vmov 0  ;;  %v187_v38 = vrot.slane %v2929_v19, 6 }
  0x9b   :  { %5721 = vst [vmem:[#allocation16_spill] sm:$0xff] %v5720_v13  ;;  %vm4046_vm8 = vmand %vm5723_vm12, %vm5722_vm0  ;;  %v126_v28 = vsel %vm4038_vm13, %v103_v22, 0.0  ;;  %vm5732_vm0 = vcmp.ge.f32.partialorder %v3832_v55, 1.0  ;;  %vm5733_vm12 = vcmp.ge.f32.partialorder %v3834_v56, 1.0  ;;  %v203_v39 = vsel %vm5607_vm15, %v3353_v30, %v3354_v29  ;;  %653 = vmatprep.subr.bf16.mxu1 %v3683_v37 }
  0x9c   :  { %vm5727_vm5 = vmmov %vm5726_vm11  ;;  %286 = vst [vmem:[#allocation2 + $0x18] sm:$0xcc] %v282_v21  ;;  %v204_v40 = vsel %vm5607_vm15, %v199_v24, %v3353_v30  ;;  %v2764_v41 = vcombine.high %v502_v31, %v504_v36  ;;  %v2763_v43 = vcombine.low %v502_v31, %v504_v36  ;;  %v5739_v46 = vmov 0  ;;  %v3693_v31 = vld [vmem:[%s5576_s1 + $0x8] sm:$0xff]  }
  0x9d   :  { %v104_v23 = vsel %vm5727_vm5, %v99_v58, %v3348_v17  ;;  %vm4059_vm4 = vmand %vm5729_vm2, %vm5728_vm3  ;;  %vm5737_vm2 = vcmp.ge.f32.partialorder %v3838_v59, 1.0  ;;  %vm5738_vm3 = vcmp.ge.f32.partialorder %v3840_v60, 1.0  ;;  %v221_v47 = vsel %vm4046_vm8, %v204_v40, 0.0  ;;  %191 = vst [vmem:[#allocation2] sm:$0xcc] %v187_v38 }
  0x9e   :  { %v125_v27 = vsel %vm4029_vm9, %v104_v23, 0.0  ;;  %vm4071_vm11 = vmand %vm5733_vm12, %vm5732_vm0  ;;  %v222_v48 = vsel %vm4059_vm4, %v203_v39, 0.0  ;;  %600 = vmatprep.subr.bf16.mxu0 %v2764_v41  ;;  %654 = vmatpush1.bf16.msra.mxu1 %v3685_v44  ;;  %vm5742_vm0 = vcmp.lt.s32.totalorder %v3816_v11, 17  ;;  %vm5750_vm6 = vcmp.ge.f32.partialorder %v3832_v55, 1.0 }
  0x9f   :  { %v5735_v32 = vsel %vm4071_vm11, 4294967295, %v5734_v32  ;;  %v2926_v35 = vpack.c.bf16 %v126_v28, %v125_v27  ;;  %vm4083_vm5 = vmand %vm5738_vm3, %vm5737_vm2  ;;  %v2930_v57 = vpack.c.bf16 %v222_v48, %v221_v47  ;;  %v101_v62 = vsel %vm5742_vm0, %v97_v51, %v99_v58  ;;  %601 = vmatpush1.bf16.msra.mxu0 %v2763_v43  ;;  %v5906_v58 = vld [vmem:[#allocation7_spill] sm:$0xff] }
  0xa0   :  { %5736 = vst [vmem:[#allocation17_spill] sm:$0xff] %v5735_v32  ;;  %v5740_v46 = vsel %vm4083_vm5, 4294967295, %v5739_v46  ;;  %vm5743_vm12 = vmmov %vm5742_vm0  ;;  %v128_v1 = vsel %vm4083_vm5, %v101_v62, 0.0  ;;  %vm5744_vm2 = vcmp.lt.s32.totalorder %v3816_v11, 1  ;;  %vm5746_vm0 = vcmp.lt.f32.partialorder %v3832_v55, 15.0 }
  0xa1   :  { %5741 = vst [vmem:[#allocation18_spill] sm:$0xff] %v5740_v46  ;;  %145 = vst [vmem:[#allocation2 + $0x30] sm:$0x33] %v2926_v35  ;;  %v102_v63 = vsel %vm5743_vm12, %v3349_v15, %v97_v51  ;;  %v252_v3 = vsel %vm5744_vm2, %v248_v52, %v3995_v33  ;;  %vm5747_vm12 = vcmp.ge.f32.partialorder %v3834_v56, 1.0  ;;  %vm5752_vm1 = vcmp.lt.f32.partialorder %v3838_v59, 15.0  ;;  %v197_v15 = vpop.permute.xlu0 %196 }
  0xa2   :  { %v127_v0 = vsel %vm4071_vm11, %v102_v63, 0.0  ;;  %vm5745_vm3 = vmmov %vm5744_vm2  ;;  %241 = vst [vmem:[#allocation2 + $0x18] sm:$0x33] %v2930_v57  ;;  %vm5751_vm2 = vcmp.ge.f32.partialorder %v3838_v59, 1.0 }
  0xa3   :  { %v253_v4 = vsel %vm5745_vm3, %v3344_v42, %v248_v52  ;;  %vm4110_vm15 = vmand %vm5747_vm12, %vm5746_vm0  ;;  %v2927_v7 = vpack.c.bf16 %v128_v1, %v127_v0  ;;  %v267_v33 = vsel %vm5751_vm2, %v252_v3, 0.0  ;;  %vm5753_vm3 = vcmp.ge.f32.partialorder %v3840_v60, 1.0 }
  0xa4   :  { %v266_v12 = vsel %vm5750_vm6, %v253_v4, 0.0  ;;  %vm4122_vm10 = vmand %vm5753_vm3, %vm5752_vm1  ;;  %vm5756_vm0 = vcmp.lt.s32.totalorder %v3816_v11, 15  ;;  %vm568_vm1 = vcmask 293888   ;;  %vm5766_vm6 = vcmp.lt.s32.totalorder %v3816_v11, 1 }
  0xa5   :  { %v2933_v42 = vpack.c.bf16 %v267_v33, %v266_v12  ;;  %146 = vst [vmem:[#allocation2] sm:$0x33] %v2927_v7  ;;  %v201_v17 = vsel %vm5756_vm0, %v197_v15, %v199_v24  ;;  %vm5757_vm12 = vmmov %vm5756_vm0  ;;  %v3689_v24 = vld [vmem:[%s5576_s1] sm:$0xff]   ;;  %vm5775_vm3 = vcmp.lt.s32.totalorder %v3816_v11, 111 }
  0xa6   :  { %v202_v19 = vsel %vm5757_vm12, %v3354_v29, %v197_v15  ;;  %v224_v23 = vsel %vm4122_vm10, %v201_v17, 0.0  ;;  %vm5767_vm2 = vmmov %vm5766_vm6 }
  0xa7   :  { %v283_v21 = vrot.slane %v2933_v42, 6  ;;  %v223_v22 = vsel %vm4110_vm15, %v202_v19, 0.0  ;;  %vm5776_vm0 = vmmov %vm5775_vm3 }
  0xa8   :  { %v2931_v26 = vpack.c.bf16 %v224_v23, %v223_v22  ;;  %vm5777_vm12 = vmmov %vm5767_vm2 }
  0xa9   :  { %287 = vst [vmem:[#allocation2 + $0x10] sm:$0xcc] %v283_v21  ;;  %v3686_v27 = vld [vmem:[#allocation2 + $0x34] ss:$-24 sps:$4 sm:$0xff]   ;;  %v3688_v28 = vld [vmem:[#allocation2 + $0x30] ss:$-24 sps:$4 sm:$0xff]  }
  0xaa   :  { %242 = vst [vmem:[#allocation2 + $0x10] sm:$0x33] %v2931_v26  ;;  %602 = vmatprep.subr.bf16.mxu0 %v3686_v27 }
  0xab   :  { %603 = vmatpush1.bf16.msra.mxu0 %v3688_v28 }
  0xae   :  { %2772 = vmatmul.mubr.msk.bf16.vlgmr.msra.gmra.mxu0 %vm568_vm1, %v3689_v24 }
  0xaf   :  { %630 = vmatprep.mubr.bf16.mxu0 %v5616_v9 }
  0xb1   :  { %v3690_v29 = vld [vmem:[#allocation2 + $0x4] ss:$16 sps:$4 sm:$0xff]   ;;  %v3692_v30 = vld [vmem:[#allocation2] ss:$16 sps:$4 sm:$0xff]  }
  0xb2   :  { %655 = vmatprep.subr.bf16.mxu1 %v3690_v29 }
  0xb3   :  { %656 = vmatpush1.bf16.msra.mxu1 %v3692_v30 }
  0xb6   :  { %2775 = vmatmul.mubr.msk.bf16.vlgmr.msra.gmra.mxu1 %vm568_vm1, %v3689_v24  ;;  %2773 = vmatmul.mubr.msk.bf16.gmra.mxu0 %vm568_vm1, %v3693_v31 }
  0xb7   :  { %683 = vmatprep.mubr.bf16.mxu1 %v5616_v9 }
  0xbe   :  { %2776 = vmatmul.mubr.msk.bf16.gmra.mxu1 %vm568_vm1, %v3693_v31  ;;  %vm5778_vm1 = vmmov %vm5767_vm2 }
  0xbf   :  { %2428 = vmatprep.mubr.bf16.mxu1 %v5616_v9 }
 0x16e   :  { %v622_v35 = vpop.f32.mrf.mxu0 }
 0x170   :  { %v624_v36 = vpop.f32.mrf.mxu0 }
 0x171   :  { %v694_v12 = vadd.f32 %v624_v36, %v622_v35 }
 0x172   :  { %v626_v37 = vpop.f32.mrf.mxu0 }
 0x174   :  { %v628_v38 = vpop.f32.mrf.mxu0 }
 0x175   :  { %v699_v62 = vadd.f32 %v628_v38, %v626_v37 }
 0x176   :  { %v4143_v39 = vpop.f32.mrf.mxu1  ;;  %v632_v40 = vpop.f32.mrf.mxu0 }
 0x177   :  { %v695_v15 = vadd.f32 %v694_v12, %v4143_v39 }
 0x178   :  { %v4145_v41 = vpop.f32.mrf.mxu1  ;;  %v634_v43 = vpop.f32.mrf.mxu0 }
 0x179   :  { %v704_v51 = vadd.f32 %v634_v43, %v632_v40  ;;  %v696_v21 = vadd.f32 %v695_v15, %v4145_v41 }
 0x17a   :  { %v679_v44 = vpop.f32.mrf.mxu1  ;;  %v636_v47 = vpop.f32.mrf.mxu0 }
 0x17b   :  { %v700_v1 = vadd.f32 %v699_v62, %v679_v44 }
 0x17c   :  { %v681_v48 = vpop.f32.mrf.mxu1  ;;  %v638_v52 = vpop.f32.mrf.mxu0 }
 0x17d   :  { %v709_v3 = vadd.f32 %v638_v52, %v636_v47  ;;  %v701_v17 = vadd.f32 %v700_v1, %v681_v48 }
 0x17e   :  { %v685_v57 = vpop.f32.mrf.mxu1 }
 0x17f   :  { %v705_v63 = vadd.f32 %v704_v51, %v685_v57 }
 0x180   :  { %v687_v0 = vpop.f32.mrf.mxu1 }
 0x181   :  { %v706_v4 = vadd.f32 %v705_v63, %v687_v0 }
 0x182   :  { %v689_v7 = vpop.f32.mrf.mxu1 }
 0x183   :  { %v710_v33 = vadd.f32 %v709_v3, %v689_v7  ;;  %707 = vadd.xlane.f32.xlu1 %v706_v4 }
 0x184   :  { %v691_v42 = vpop.f32.mrf.mxu1 }
 0x185   :  { %v711_v19 = vadd.f32 %v710_v33, %v691_v42 }
 0x187   :  { %702 = vadd.xlane.f32.xlu1 %v701_v17  ;;  %712 = vadd.xlane.f32.xlu0 %v711_v19 }
 0x18b   :  { %697 = vadd.xlane.f32.xlu0 %v696_v21 }
 0x20c   :  { %v708_v22 = vpop.xlane.xlu1 %707 }
 0x20d   :  { %v716_v23 = vmul.f32 0.001953125, %v708_v22 }
 0x20f   :  { %v4149_v26 = vsub.f32 %v632_v40, %v716_v23  ;;  %v4151_v27 = vsub.f32 %v634_v43, %v716_v23  ;;  %v4153_v29 = vsub.f32 %v685_v57, %v716_v23  ;;  %v4159_v63 = vsub.f32 %v687_v0, %v716_v23 }
 0x210   :  { %v703_v28 = vpop.xlane.xlu1 %702  ;;  %v713_v24 = vpop.xlane.xlu0 %712 }
 0x211   :  { %v715_v30 = vmul.f32 0.001953125, %v703_v28  ;;  %v717_v31 = vmul.f32 0.001953125, %v713_v24  ;;  %v742_v51 = vmul.f32 %v4149_v26, %v4149_v26  ;;  %v743_v62 = vmul.f32 %v4151_v27, %v4151_v27 }
 0x212   :  { %v744_v4 = vmul.f32 %v4153_v29, %v4153_v29 }
 0x213   :  { %v4161_v1 = vsub.f32 %v626_v37, %v715_v30  ;;  %v4163_v40 = vsub.f32 %v628_v38, %v715_v30  ;;  %v4165_v43 = vsub.f32 %v636_v47, %v717_v31  ;;  %v4167_v3 = vsub.f32 %v638_v52, %v717_v31 }
 0x214   :  { %v698_v57 = vpop.xlane.xlu0 %697  ;;  %v760_v12 = vadd.f32 %v743_v62, %v742_v51  ;;  %v4171_v33 = vsub.f32 %v689_v7, %v717_v31  ;;  %v4173_v15 = vsub.f32 %v691_v42, %v717_v31  ;;  %v4179_v47 = vsub.f32 %v679_v44, %v715_v30 }
 0x215   :  { %v714_v17 = vmul.f32 0.001953125, %v698_v57  ;;  %v746_v37 = vmul.f32 %v4165_v43, %v4165_v43  ;;  %v747_v38 = vmul.f32 %v4167_v3, %v4167_v3  ;;  %v745_v52 = vmul.f32 %v4159_v63, %v4159_v63 }
 0x216   :  { %v761_v0 = vadd.f32 %v760_v12, %v744_v4  ;;  %v748_v19 = vmul.f32 %v4171_v33, %v4171_v33  ;;  %v738_v7 = vmul.f32 %v4161_v1, %v4161_v1  ;;  %v739_v23 = vmul.f32 %v4163_v40, %v4163_v40 }
 0x217   :  { %v4187_v42 = vsub.f32 %v622_v35, %v714_v17  ;;  %v4189_v21 = vsub.f32 %v624_v36, %v714_v17  ;;  %v765_v22 = vadd.f32 %v747_v38, %v746_v37  ;;  %v749_v28 = vmul.f32 %v4173_v15, %v4173_v15 }
 0x218   :  { %v762_v44 = vadd.f32 %v761_v0, %v745_v52  ;;  %v4195_v24 = vsub.f32 %v681_v48, %v715_v30  ;;  %v4198_v31 = vsub.f32 %v4143_v39, %v714_v17  ;;  %v740_v35 = vmul.f32 %v4179_v47, %v4179_v47 }
 0x219   :  { %v766_v51 = vadd.f32 %v765_v22, %v748_v19  ;;  %v755_v62 = vadd.f32 %v739_v23, %v738_v7  ;;  %v734_v36 = vmul.f32 %v4187_v42, %v4187_v42  ;;  %v4205_v57 = vsub.f32 %v4145_v41, %v714_v17  ;;  %v828_v17 = vld [vmem:[%s5577_s3 + $0x10] sm:$0xff]  ;;  %v829_v19 = vld [vmem:[%s5577_s3 + $0x18] sm:$0xff] }
 0x21a   :  { %763 = vadd.xlane.f32.xlu0 %v762_v44  ;;  %v735_v4 = vmul.f32 %v4189_v21, %v4189_v21  ;;  %v736_v39 = vmul.f32 %v4198_v31, %v4198_v31  ;;  %v741_v37 = vmul.f32 %v4195_v24, %v4195_v24 }
 0x21b   :  { %v767_v48 = vadd.f32 %v766_v51, %v749_v28  ;;  %v756_v30 = vadd.f32 %v755_v62, %v740_v35  ;;  %v737_v38 = vmul.f32 %v4205_v57, %v4205_v57 }
 0x21c   :  { %v750_v12 = vadd.f32 %v735_v4, %v734_v36 }
 0x21d   :  { %768 = vadd.xlane.f32.xlu1 %v767_v48  ;;  %v757_v0 = vadd.f32 %v756_v30, %v741_v37  ;;  %v776_v30 = vld [vmem:[%s5578_s2 + $0x10] sm:$0xff] }
 0x21e   :  { %v751_v52 = vadd.f32 %v750_v12, %v736_v39 }
 0x220   :  { %v752_v41 = vadd.f32 %v751_v52, %v737_v38  ;;  %v774_v38 = vld [vmem:[%s5578_s2] sm:$0xff] }
 0x221   :  { %758 = vadd.xlane.f32.xlu1 %v757_v0 }
 0x222   :  { %753 = vadd.xlane.f32.xlu0 %v752_v41 }
 0x232   :  { %842 = vperm.xlu1 %3356, %v828_v17   ;;  %v775_v17 = vld [vmem:[%s5578_s2 + $0x8] sm:$0xff] }
 0x236   :  { %847 = vperm.xlu1 %3356, %v829_v19  }
 0x2a3   :  { %v764_v7 = vpop.xlane.xlu0 %763 }
 0x2a4   :  { %v772_v22 = vmul.f32 0.001953125, %v764_v7  ;;  %v826_v7 = vld [vmem:[%s5577_s3] sm:$0xff] }
 0x2a6   :  { %v780_v23 = vadd.f32 1e-05, %v772_v22  ;;  %v769_v44 = vpop.xlane.xlu1 %768 }
 0x2a7   :  { %v773_v48 = vmul.f32 0.001953125, %v769_v44 }
 0x2a8   :  { %3698 = vrsqrt.f32 %v780_v23  ;;  %v777_v23 = vld [vmem:[%s5578_s2 + $0x18] sm:$0xff] }
 0x2a9   :  { %v781_v12 = vadd.f32 1e-05, %v773_v48 }
 0x2aa   :  { %v759_v28 = vpop.xlane.xlu1 %758 }
 0x2ab   :  { %v771_v51 = vmul.f32 0.001953125, %v759_v28  ;;  %v754_v35 = vpop.xlane.xlu0 %753  ;;  %v827_v28 = vld [vmem:[%s5577_s3 + $0x8] sm:$0xff] }
 0x2ac   :  { %v770_v62 = vmul.f32 0.001953125, %v754_v35 }
 0x2ad   :  { %v779_v36 = vadd.f32 1e-05, %v771_v51 }
 0x2ae   :  { %v778_v4 = vadd.f32 1e-05, %v770_v62  ;;  %v843_v51 = vpop.permute.xlu1 %842 }
 0x2b0   :  { %3700 = vrsqrt.f32 %v778_v4 }
 0x2b1   :  { %3702 = vrsqrt.f32 %v779_v36 }
 0x2b2   :  { %3704 = vrsqrt.f32 %v781_v12  ;;  %v848_v35 = vpop.permute.xlu1 %847 }
 0x2b5   :  { %v3699_v39 = vpop.eup %3698 }
 0x2b6   :  { %v788_v37 = vmul.f32 %v3699_v39, %v776_v30 }
 0x2b8   :  { %802 = vperm.xlu0 %3355, %v788_v37  }
 0x2bd   :  { %v3701_v52 = vpop.eup %3700 }
 0x2be   :  { %v786_v0 = vmul.f32 %v3701_v52, %v774_v38  ;;  %v3703_v41 = vpop.eup %3702 }
 0x2bf   :  { %v787_v19 = vmul.f32 %v3703_v41, %v775_v17  ;;  %v3705_v22 = vpop.eup %3704 }
 0x2c0   :  { %792 = vperm.xlu1 %3356, %v786_v0   ;;  %v789_v44 = vmul.f32 %v3705_v22, %v777_v23 }
 0x2c4   :  { %797 = vperm.xlu1 %3356, %v787_v19  }
 0x2c8   :  { %832 = vperm.xlu1 %3356, %v826_v7  }
 0x2cc   :  { %807 = vperm.xlu1 %3356, %v789_v44  }
 0x2d0   :  { %837 = vperm.xlu1 %3356, %v827_v28  }
 0x33b   :  { %v793_v62 = vpop.permute.xlu1 %792 }
 0x33c   :  { %v810_v39 = vmul.f32 %v793_v62, %v4187_v42  ;;  %v811_v12 = vmul.f32 %v793_v62, %v4189_v21  ;;  %v812_v7 = vmul.f32 %v793_v62, %v4198_v31  ;;  %v813_v10 = vmul.f32 %v793_v62, %v4205_v57 }
 0x33f   :  { %v798_v36 = vpop.permute.xlu1 %797 }
 0x340   :  { %v814_v37 = vmul.f32 %v798_v36, %v4161_v1  ;;  %v815_v52 = vmul.f32 %v798_v36, %v4163_v40  ;;  %v816_v0 = vmul.f32 %v798_v36, %v4179_v47  ;;  %v817_v42 = vmul.f32 %v798_v36, %v4195_v24  ;;  %v803_v40 = vpop.permute.xlu0 %802 }
 0x341   :  { %v818_v24 = vmul.f32 %v803_v40, %v4149_v26  ;;  %v819_v36 = vmul.f32 %v803_v40, %v4151_v27 }
 0x343   :  { %v833_v4 = vpop.permute.xlu1 %832  ;;  %v858_v26 = vadd.f32 %v843_v51, %v818_v24  ;;  %v859_v27 = vadd.f32 %v843_v51, %v819_v36 }
 0x344   :  { %v850_v41 = vadd.f32 %v833_v4, %v810_v39  ;;  %v851_v17 = vadd.f32 %v833_v4, %v811_v12  ;;  %v852_v44 = vadd.f32 %v833_v4, %v812_v7  ;;  %v853_v31 = vadd.f32 %v833_v4, %v813_v10 }
 0x345   :  { %v820_v10 = vmul.f32 %v803_v40, %v4153_v29  ;;  %v821_v4 = vmul.f32 %v803_v40, %v4159_v63  ;;  %v874_v29 = vmax.f32 %v858_v26, 0.0  ;;  %v875_v63 = vmax.f32 %v859_v27, 0.0  ;;  %v4388_v26 = vld [vmem:[%s5579_s4 + $0x4] ss:$12 sps:$4 sm:$0xff]  }
 0x346   :  { %v866_v21 = vmax.f32 %v850_v41, 0.0  ;;  %v867_v28 = vmax.f32 %v851_v17, 0.0  ;;  %v869_v17 = vmax.f32 %v853_v31, 0.0  ;;  %2385 = vmatprep.mubr.bf16.mxu0 %v4388_v26 }
 0x347   :  { %v808_v48 = vpop.permute.xlu1 %807 }
 0x348   :  { %v825_v30 = vmul.f32 %v808_v48, %v4173_v15  ;;  %v822_v57 = vmul.f32 %v808_v48, %v4165_v43  ;;  %v823_v62 = vmul.f32 %v808_v48, %v4167_v3 }
 0x34a   :  { %v4243_v38 = vadd.f32 %v848_v35, %v825_v30  ;;  %v863_v43 = vadd.f32 %v848_v35, %v823_v62 }
 0x34b   :  { %v838_v19 = vpop.permute.xlu1 %837 }
 0x34c   :  { %v854_v22 = vadd.f32 %v838_v19, %v814_v37  ;;  %v855_v23 = vadd.f32 %v838_v19, %v815_v52  ;;  %v856_v15 = vadd.f32 %v838_v19, %v816_v0  ;;  %v857_v9 = vadd.f32 %v838_v19, %v817_v42 }
 0x34d   :  { %v868_v37 = vmax.f32 %v852_v44, 0.0  ;;  %v824_v52 = vmul.f32 %v808_v48, %v4171_v33  ;;  %v862_v19 = vadd.f32 %v848_v35, %v822_v57  ;;  %v860_v33 = vadd.f32 %v843_v51, %v820_v10 }
 0x34e   :  { %v870_v1 = vmax.f32 %v854_v22, 0.0  ;;  %v871_v30 = vmax.f32 %v855_v23, 0.0  ;;  %v872_v47 = vmax.f32 %v856_v15, 0.0  ;;  %v873_v0 = vmax.f32 %v857_v9, 0.0 }
 0x34f   :  { %v864_v7 = vadd.f32 %v848_v35, %v824_v52  ;;  %v861_v9 = vadd.f32 %v843_v51, %v821_v4  ;;  %v878_v48 = vmax.f32 %v862_v19, 0.0  ;;  %v879_v22 = vmax.f32 %v863_v43, 0.0 }
 0x350   :  { %v4250_v39 = vpack.i.bf16 %v871_v30, %v867_v28  ;;  %v4252_v12 = vpack.i.bf16 %v870_v1, %v866_v21  ;;  %v3372_v41 = vpack.i.bf16 %v872_v47, %v868_v37  ;;  %v4268_v3 = vpack.i.bf16 %v873_v0, %v869_v17 }
 0x351   :  { %v880_v23 = vmax.f32 %v864_v7, 0.0  ;;  %v881_v15 = vmax.f32 %v4243_v38, 0.0  ;;  %v876_v42 = vmax.f32 %v860_v33, 0.0  ;;  %v877_v44 = vmax.f32 %v861_v9, 0.0 }
 0x352   :  { %3363 = vrot.lane.b32.xlu0 %v4250_v39, %s3731_s17  ;;  %3358 = vrot.lane.b32.xlu1 %v4252_v12, %s3731_s17  ;;  %v4279_v51 = vpack.c.bf16 %v879_v22, %v875_v63  ;;  %v4281_v35 = vpack.c.bf16 %v878_v48, %v874_v29  ;;  %v4283_v40 = vpack.c.bf16 %v871_v30, %v867_v28 }
 0x353   :  { %v4285_v31 = vpack.c.bf16 %v870_v1, %v866_v21  ;;  %v4287_v24 = vpack.c.bf16 %v881_v15, %v877_v44  ;;  %v4289_v36 = vpack.c.bf16 %v880_v23, %v876_v42  ;;  %v4291_v38 = vpack.c.bf16 %v873_v0, %v869_v17 }
 0x354   :  { %5758 = vst [vmem:[#allocation19_spill] sm:$0xff] %v4279_v51  ;;  %5759 = vst [vmem:[#allocation20_spill] sm:$0xff] %v4281_v35  ;;  %v4293_v57 = vpack.c.bf16 %v872_v47, %v868_v37  ;;  %v3502_v21 = vpack.i.bf16 %v879_v22, %v875_v63  ;;  %v3497_v28 = vpack.i.bf16 %v878_v48, %v874_v29 }
 0x355   :  { %5760 = vst [vmem:[#allocation21_spill] sm:$0xff] %v4283_v40  ;;  %5761 = vst [vmem:[#allocation22_spill] sm:$0xff] %v4285_v31  ;;  %v3512_v1 = vpack.i.bf16 %v880_v23, %v876_v42  ;;  %v3517_v30 = vpack.i.bf16 %v881_v15, %v877_v44 }
 0x356   :  { %3373 = vrot.lane.b32.xlu0 %v3372_v41, %s3727_s14  ;;  %3368 = vrot.lane.b32.xlu1 %v4250_v39, %s3727_s14  ;;  %5762 = vst [vmem:[#allocation23_spill] sm:$0xff] %v4287_v24  ;;  %5763 = vst [vmem:[#allocation24_spill] sm:$0xff] %v4289_v36 }
 0x357   :  { %5764 = vst [vmem:[#allocation25_spill] sm:$0xff] %v4291_v38  ;;  %5765 = vst [vmem:[#allocation26_spill] sm:$0xff] %v4293_v57 }
 0x35a   :  { %3383 = vrot.lane.b32.xlu0 %v4252_v12, %s3727_s14  ;;  %3378 = vrot.lane.b32.xlu1 %v4268_v3, %s3731_s17 }
 0x35e   :  { %3393 = vrot.lane.b32.xlu0 %v4250_v39, %s3733_s19  ;;  %3388 = vrot.lane.b32.xlu1 %v4252_v12, %s3733_s19 }
 0x362   :  { %3403 = vrot.lane.b32.xlu0 %v4268_v3, %s3733_s19  ;;  %3398 = vrot.lane.b32.xlu1 %v3372_v41, %s3731_s17 }
 0x366   :  { %3413 = vrot.lane.b32.xlu0 %v4250_v39, %s3730_s16  ;;  %3408 = vrot.lane.b32.xlu1 %v4252_v12, %s3730_s16 }
 0x36a   :  { %3423 = vrot.lane.b32.xlu0 %v4268_v3, %s3730_s16  ;;  %3418 = vrot.lane.b32.xlu1 %v3372_v41, %s3733_s19 }
 0x36e   :  { %3433 = vrot.lane.b32.xlu0 %v4250_v39, %s3732_s18  ;;  %3428 = vrot.lane.b32.xlu1 %v4252_v12, %s3732_s18 }
 0x372   :  { %3443 = vrot.lane.b32.xlu0 %v4268_v3, %s3732_s18  ;;  %3438 = vrot.lane.b32.xlu1 %v3372_v41, %s3730_s16 }
 0x376   :  { %3453 = vrot.lane.b32.xlu0 %v4250_v39, %s3728_s15  ;;  %3448 = vrot.lane.b32.xlu1 %v3372_v41, %s3732_s18 }
 0x37a   :  { %3463 = vrot.lane.b32.xlu0 %v4252_v12, %s3728_s15  ;;  %3458 = vrot.lane.b32.xlu1 %v3372_v41, %s3728_s15 }
 0x37e   :  { %3473 = vrot.lane.b32.xlu0 %v3372_v41, %s3729_s0  ;;  %3468 = vrot.lane.b32.xlu1 %v4250_v39, %s3729_s0 }
 0x382   :  { %3483 = vrot.lane.b32.xlu0 %v4252_v12, %s3729_s0  ;;  %3478 = vrot.lane.b32.xlu1 %v4268_v3, %s3728_s15 }
 0x386   :  { %3493 = vrot.lane.b32.xlu0 %v3372_v41, %s3726_s13  ;;  %3488 = vrot.lane.b32.xlu1 %v4250_v39, %s3726_s13 }
 0x38a   :  { %3503 = vrot.lane.b32.xlu0 %v3502_v21, %s3731_s17  ;;  %3498 = vrot.lane.b32.xlu1 %v3497_v28, %s3731_s17 }
 0x38e   :  { %3513 = vrot.lane.b32.xlu0 %v3512_v1, %s3727_s14  ;;  %3508 = vrot.lane.b32.xlu1 %v3502_v21, %s3727_s14 }
 0x392   :  { %3523 = vrot.lane.b32.xlu0 %v3497_v28, %s3727_s14  ;;  %3518 = vrot.lane.b32.xlu1 %v3517_v30, %s3731_s17 }
 0x396   :  { %3533 = vrot.lane.b32.xlu0 %v3502_v21, %s3733_s19  ;;  %3528 = vrot.lane.b32.xlu1 %v3497_v28, %s3733_s19 }
 0x39a   :  { %3543 = vrot.lane.b32.xlu0 %v3517_v30, %s3733_s19  ;;  %3538 = vrot.lane.b32.xlu1 %v3512_v1, %s3731_s17 }
 0x39e   :  { %3553 = vrot.lane.b32.xlu0 %v3502_v21, %s3730_s16  ;;  %3548 = vrot.lane.b32.xlu1 %v3497_v28, %s3730_s16 }
 0x3a2   :  { %3563 = vrot.lane.b32.xlu0 %v3517_v30, %s3730_s16  ;;  %3558 = vrot.lane.b32.xlu1 %v3512_v1, %s3733_s19 }
 0x3a6   :  { %3573 = vrot.lane.b32.xlu0 %v3502_v21, %s3732_s18  ;;  %3568 = vrot.lane.b32.xlu1 %v3497_v28, %s3732_s18 }
 0x3aa   :  { %3583 = vrot.lane.b32.xlu0 %v3517_v30, %s3732_s18  ;;  %3578 = vrot.lane.b32.xlu1 %v3512_v1, %s3730_s16 }
 0x3ae   :  { %3593 = vrot.lane.b32.xlu0 %v3502_v21, %s3728_s15  ;;  %3588 = vrot.lane.b32.xlu1 %v3512_v1, %s3732_s18 }
 0x3b2   :  { %3603 = vrot.lane.b32.xlu0 %v3497_v28, %s3728_s15  ;;  %3598 = vrot.lane.b32.xlu1 %v3512_v1, %s3728_s15 }
 0x3b6   :  { %3613 = vrot.lane.b32.xlu0 %v3512_v1, %s3729_s0  ;;  %3608 = vrot.lane.b32.xlu1 %v3502_v21, %s3729_s0 }
 0x3ba   :  { %3623 = vrot.lane.b32.xlu0 %v3497_v28, %s3729_s0  ;;  %3618 = vrot.lane.b32.xlu1 %v3517_v30, %s3728_s15 }
 0x3be   :  { %3633 = vrot.lane.b32.xlu0 %v3512_v1, %s3726_s13  ;;  %3628 = vrot.lane.b32.xlu1 %v3502_v21, %s3726_s13 }
 0x3c2   :  { %3648 = vrot.lane.b32.xlu0 %v3497_v28, %s3726_s13  ;;  %3638 = vrot.lane.b32.xlu1 %v3517_v30, %s3729_s0 }
 0x3c4   :  { %v3359_v47 = vpop.permute.xlu1 %3358  ;;  %v4358_v39 = vpop.permute.xlu0 %3363 }
 0x3c5   :  { %v3361_v37 = vunpack.i.h.bf16 %v3359_v47  ;;  %v3360_v62 = vunpack.i.l.bf16 %v3359_v47  ;;  %v5617_v52 = vunpack.i.h.bf16 %v4358_v39  ;;  %v5618_v0 = vunpack.i.l.bf16 %v4358_v39 }
 0x3c6   :  { %3653 = vrot.lane.b32.xlu0 %v4252_v12, %s3726_s13  ;;  %3643 = vrot.lane.b32.xlu1 %v4268_v3, %s3729_s0 }
 0x3c7   :  { %v4370_v41 = vsel %vm5766_vm6, %v3361_v37, %v5617_v52  ;;  %v4376_v10 = vsel %vm5767_vm2, %v3360_v62, %v5618_v0  ;;  %vm5779_vm6 = vmmov %vm5776_vm0 }
 0x3c8   :  { %v3369_v17 = vpop.permute.xlu1 %3368  ;;  %v4380_v12 = vpop.permute.xlu0 %3373  ;;  %vm5781_vm2 = vmmov %vm5776_vm0 }
 0x3c9   :  { %5768 = vst [vmem:[#allocation27_spill] sm:$0xff] %v4380_v12  ;;  %v3371_v4 = vunpack.i.h.bf16 %v3369_v17  ;;  %v3370_v52 = vunpack.i.l.bf16 %v3369_v17  ;;  %v5622_v0 = vunpack.i.h.bf16 %v4380_v12  ;;  %v5625_v57 = vunpack.i.l.bf16 %v4380_v12 }
 0x3ca   :  { %3663 = vrot.lane.b32.xlu0 %v4268_v3, %s3726_s13  ;;  %3658 = vrot.lane.b32.xlu1 %v3517_v30, %s3726_s13 }
 0x3cb   :  { %v4442_v40 = vsel %vm5775_vm3, %v3371_v4, %v5622_v0  ;;  %v4448_v17 = vsel %vm5776_vm0, %v3370_v52, %v5625_v57  ;;  %vm5784_vm3 = vcmp.lt.s32.totalorder %v3816_v11, 15 }
 0x3cc   :  { %v3379_v27 = vpop.permute.xlu1 %3378  ;;  %v4390_v19 = vpop.permute.xlu0 %3383  ;;  %vm5785_vm0 = vmmov %vm5784_vm3 }
 0x3cd   :  { %5769 = vst [vmem:[#allocation28_spill] sm:$0xff] %v4390_v19  ;;  %v3381_v38 = vunpack.i.h.bf16 %v3379_v27  ;;  %v3380_v36 = vunpack.i.l.bf16 %v3379_v27  ;;  %v5632_v24 = vunpack.i.h.bf16 %v4390_v19  ;;  %v5780_v12 = vunpack.i.l.bf16 %v4390_v19 }
 0x3ce   :  { %3673 = vrot.lane.b32.xlu0 %v4268_v3, %s3727_s14  ;;  %3668 = vrot.lane.b32.xlu1 %v3517_v30, %s3727_s14 }
 0x3cf   :  { %v4452_v27 = vsel %vm5777_vm12, %v3380_v36, %v3360_v62  ;;  %v4456_v16 = vsel %vm5778_vm1, %v3381_v38, %v3361_v37  ;;  %v4462_v0 = vsel %vm5779_vm6, %v5632_v24, %v3371_v4  ;;  %v4468_v57 = vsel %vm5781_vm2, %v5780_v12, %v3370_v52  ;;  %vm5786_vm12 = vmmov %vm5778_vm1 }
 0x3d0   :  { %v4396_v43 = vpop.permute.xlu1 %3388  ;;  %v4398_v7 = vpop.permute.xlu0 %3393  ;;  %vm5788_vm6 = vmmov %vm5778_vm1 }
 0x3d1   :  { %v3391_v35 = vunpack.i.h.bf16 %v4396_v43  ;;  %v3390_v62 = vunpack.i.l.bf16 %v4396_v43  ;;  %v3396_v51 = vunpack.i.h.bf16 %v4398_v7  ;;  %v3395_v37 = vunpack.i.l.bf16 %v4398_v7  ;;  %vm5790_vm2 = vmmov %vm5778_vm1 }
 0x3d3   :  { %v4492_v24 = vsel %vm5784_vm3, %v3391_v35, %v3396_v51  ;;  %v4496_v52 = vsel %vm5785_vm0, %v3390_v62, %v3395_v37  ;;  %vm5791_vm3 = vmmov %vm5785_vm0 }
 0x3d4   :  { %v3399_v33 = vpop.permute.xlu1 %3398  ;;  %v4400_v9 = vpop.permute.xlu0 %3403 }
 0x3d5   :  { %v3401_v45 = vunpack.i.h.bf16 %v3399_v33  ;;  %v3400_v14 = vunpack.i.l.bf16 %v3399_v33  ;;  %v3406_v43 = vunpack.i.h.bf16 %v4400_v9  ;;  %v3405_v19 = vunpack.i.l.bf16 %v4400_v9 }
 0x3d7   :  { %v4500_v12 = vsel %vm5786_vm12, %v3400_v14, %v3380_v36  ;;  %v4504_v9 = vsel %vm5778_vm1, %v3401_v45, %v3381_v38  ;;  %v5789_v36 = vunpack.i.h.bf16 %v4358_v39  ;;  %v4523_v38 = vsel %vm5791_vm3, %v3406_v43, %v3391_v35 }
 0x3d8   :  { %v4402_v29 = vpop.permute.xlu1 %3408  ;;  %v4404_v63 = vpop.permute.xlu0 %3413  ;;  %vm5794_vm12 = vcmp.lt.s32.totalorder %v3816_v11, 16  ;;  %vm5803_vm3 = vcmp.ge.f32.partialorder %v3826_v53, 1.0 }
 0x3d9   :  { %v4519_v46 = vsel %vm5790_vm2, %v5789_v36, %v3401_v45  ;;  %v5796_v45 = vunpack.i.l.bf16 %v4404_v63  ;;  %v5797_v36 = vunpack.i.l.bf16 %v4402_v29  ;;  %vm5798_vm1 = vmmov %vm5794_vm12 }
 0x3db   :  { %v4544_v35 = vsel %vm5798_vm1, %v5797_v36, %v5796_v45  ;;  %vm5807_vm1 = vcmp.lt.s32.totalorder %v3816_v11, 111 }
 0x3dc   :  { %v4406_v48 = vpop.permute.xlu1 %3418  ;;  %v4408_v22 = vpop.permute.xlu0 %3423  ;;  %5799 = vst [vmem:[#allocation37_spill] sm:$0xff] %v4544_v35 }
 0x3e0   :  { %v4410_v23 = vpop.permute.xlu1 %3428  ;;  %v4412_v3 = vpop.permute.xlu0 %3433 }
 0x3e4   :  { %v4414_v15 = vpop.permute.xlu1 %3438  ;;  %v4416_v42 = vpop.permute.xlu0 %3443 }
 0x3e8   :  { %v4418_v44 = vpop.permute.xlu1 %3448  ;;  %v4420_v21 = vpop.permute.xlu0 %3453 }
 0x3ec   :  { %v4422_v28 = vpop.permute.xlu1 %3458  ;;  %v4424_v1 = vpop.permute.xlu0 %3463 }
 0x3ed   :  { %5770 = vst [vmem:[#allocation29_spill] sm:$0xff] %v4424_v1 }
 0x3f0   :  { %v4426_v30 = vpop.permute.xlu1 %3468  ;;  %v4428_v47 = vpop.permute.xlu0 %3473 }
 0x3f1   :  { %5771 = vst [vmem:[#allocation30_spill] sm:$0xff] %v4426_v30  ;;  %5772 = vst [vmem:[#allocation31_spill] sm:$0xff] %v4428_v47 }
 0x3f4   :  { %v4434_v31 = vpop.permute.xlu1 %3478  ;;  %v4436_v20 = vpop.permute.xlu0 %3483 }
 0x3f5   :  { %5773 = vst [vmem:[#allocation32_spill] sm:$0xff] %v4434_v31  ;;  %5774 = vst [vmem:[#allocation33_spill] sm:$0xff] %v4436_v20  ;;  %v4527_v31 = vsel %vm5785_vm0, %v3405_v19, %v3390_v62  ;;  %v3420_v62 = vunpack.i.l.bf16 %v4406_v48 }
 0x3f6   :  { %vm4565_vm0 = vmpackc.low %vm5803_vm3, %vm5803_vm3 }
 0x3f8   :  { %v4474_v6 = vpop.permute.xlu1 %3488  ;;  %v4476_v4 = vpop.permute.xlu0 %3493  ;;  %v5892_v25 = vld [vmem:[#allocation30_spill] sm:$0xff] }
 0x3f9   :  { %5782 = vst [vmem:[#allocation34_spill] sm:$0xff] %v4474_v6  ;;  %5783 = vst [vmem:[#allocation35_spill] sm:$0xff] %v4476_v4  ;;  %v5787_v4 = vunpack.i.l.bf16 %v4358_v39 }
 0x3fb   :  { %v4512_v6 = vsel %vm5788_vm6, %v5787_v4, %v3400_v14  ;;  %v5792_v4 = vunpack.i.h.bf16 %v4404_v63  ;;  %vm5800_vm6 = vmmov %vm5790_vm2 }
 0x3fc   :  { %v3499_v33 = vpop.permute.xlu1 %3498  ;;  %v4506_v7 = vpop.permute.xlu0 %3503 }
 0x3fd   :  { %v3501_v61 = vunpack.i.h.bf16 %v3499_v33  ;;  %v3500_v32 = vunpack.i.l.bf16 %v3499_v33  ;;  %v5651_v20 = vunpack.i.h.bf16 %v4506_v7  ;;  %v5793_v33 = vunpack.i.h.bf16 %v4402_v29 }
 0x3fe   :  { %v5801_v5 = vunpack.i.l.bf16 %v4506_v7 }
 0x3ff   :  { %v4536_v39 = vsel %vm5794_vm12, %v5793_v33, %v5792_v4  ;;  %v1285_v14 = vsel %vm5800_vm6, %v3501_v61, %v5651_v20  ;;  %v3421_v33 = vunpack.i.h.bf16 %v4406_v48  ;;  %vm5806_vm12 = vcmp.lt.s32.totalorder %v3816_v11, 15 }
 0x400   :  { %5795 = vst [vmem:[#allocation36_spill] sm:$0xff] %v4536_v39  ;;  %v1284_v45 = vsel %vm5790_vm2, %v3500_v32, %v5801_v5  ;;  %v3509_v36 = vpop.permute.xlu1 %3508  ;;  %v4560_v60 = vpop.permute.xlu0 %3513  ;;  %v4579_v1 = vsel %vm5806_vm12, %v3420_v62, %v3405_v19  ;;  %vm5808_vm6 = vmmov %vm5806_vm12 }
 0x401   :  { %5802 = vst [vmem:[#allocation38_spill] sm:$0xff] %v4560_v60  ;;  %v3089_v56 = vpack.c.bf16 %v1285_v14, %v1284_v45  ;;  %v3511_v47 = vunpack.i.h.bf16 %v3509_v36  ;;  %v3510_v4 = vunpack.i.l.bf16 %v3509_v36  ;;  %v5658_v48 = vunpack.i.h.bf16 %v4560_v60  ;;  %vm5809_vm2 = vmmov %vm5808_vm6 }
 0x402   :  { %v5661_v53 = vunpack.i.l.bf16 %v4560_v60  ;;  %v3426_v14 = vunpack.i.h.bf16 %v4408_v22  ;;  %v3425_v45 = vunpack.i.l.bf16 %v4408_v22  ;;  %v4591_v13 = vsel %vm5808_vm6, %v3421_v33, %v3406_v43  ;;  %vm5810_vm3 = vmmov %vm5809_vm2 }
 0x403   :  { %v1817_v36 = vsel %vm5807_vm1, %v3511_v47, %v5658_v48  ;;  %3090 = vmatprep.subr.msk.bf16.mxu0 %vm4565_vm0, %v3089_v56  ;;  %v4595_v19 = vsel %vm5809_vm2, %v3395_v37, %v3420_v62  ;;  %v4599_v30 = vsel %vm5810_vm3, %v3396_v51, %v3421_v33  ;;  %vm5811_vm12 = vmmov %vm5807_vm1  ;;  %vm5812_vm6 = vcmp.lt.s32.totalorder %v3816_v11, 1 }
 0x404   :  { %v1816_v22 = vsel %vm5811_vm12, %v3510_v4, %v5661_v53  ;;  %v3519_v48 = vpop.permute.xlu1 %3518  ;;  %v4605_v5 = vpop.permute.xlu0 %3523  ;;  %vm3172_vm1 = vmpackc.low %vm3867_vm14, %vm3867_vm14 }
 0x405   :  { %v3173_v56 = vpack.c.bf16 %v1817_v36, %v1816_v22  ;;  %v3521_v43 = vunpack.i.h.bf16 %v3519_v48  ;;  %v3520_v37 = vunpack.i.l.bf16 %v3519_v48  ;;  %v5666_v62 = vunpack.i.h.bf16 %v4605_v5  ;;  %vm5813_vm2 = vmmov %vm5812_vm6 }
 0x406   :  { %v5668_v53 = vunpack.i.l.bf16 %v4605_v5  ;;  %vm5814_vm3 = vmmov %vm5811_vm12  ;;  %vm5815_vm12 = vcmp.ge.f32.partialorder %v3822_v49, 1.0  ;;  %v5819_v49 = vunpack.i.h.bf16 %v4402_v29  ;;  %v5842_v22 = vunpack.i.h.bf16 %v4506_v7 }
 0x407   :  { %v1288_v39 = vsel %vm5812_vm6, %v3520_v37, %v3500_v32  ;;  %v1289_v36 = vsel %vm5813_vm2, %v3521_v43, %v3501_v61  ;;  %v1821_v48 = vsel %vm5814_vm3, %v5666_v62, %v3511_v47  ;;  %3174 = vmatprep.subr.msk.bf16.mxu1 %vm3172_vm1, %v3173_v56  ;;  %vm4632_vm11 = vmpackc.low %vm5815_vm12, %vm5815_vm12  ;;  %v3440_v32 = vunpack.i.l.bf16 %v4414_v15 }
 0x408   :  { %v3092_v33 = vpack.c.bf16 %v1289_v36, %v1288_v39  ;;  %vm5818_vm6 = vmmov %vm5814_vm3  ;;  %v3529_v62 = vpop.permute.xlu1 %3528  ;;  %v4643_v56 = vpop.permute.xlu0 %3533  ;;  %vm5820_vm3 = vcmp.lt.s32.totalorder %v3816_v11, 16 }
 0x409   :  { %v1820_v47 = vsel %vm5818_vm6, %v5668_v53, %v3510_v4  ;;  %vm3175_vm2 = vmpackc.low %vm3851_vm7, %vm3851_vm7  ;;  %v3531_v51 = vunpack.i.h.bf16 %v3529_v62  ;;  %v3530_v60 = vunpack.i.l.bf16 %v3529_v62  ;;  %v5669_v61 = vunpack.i.h.bf16 %v4643_v56 }
 0x40a   :  { %v3176_v35 = vpack.c.bf16 %v1821_v48, %v1820_v47  ;;  %v4653_v39 = vsel %vm5820_vm3, %v3426_v14, %v5819_v49  ;;  %v5821_v4 = vunpack.i.l.bf16 %v4402_v29  ;;  %vm5822_vm12 = vmmov %vm5820_vm3  ;;  %v3441_v53 = vunpack.i.h.bf16 %v4414_v15  ;;  %3093 = vmatpush1.bf16.msk.msra.mxu0 %vm4632_vm11, %v3092_v33 }
 0x40b   :  { %v5670_v48 = vunpack.i.l.bf16 %v4643_v56  ;;  %v5823_v62 = vunpack.i.h.bf16 %v4412_v3  ;;  %v5824_v47 = vunpack.i.h.bf16 %v4410_v23  ;;  %vm5825_vm6 = vcmp.lt.s32.totalorder %v3816_v11, 17 }
 0x40c   :  { %v4659_v36 = vsel %vm5822_vm12, %v3425_v45, %v5821_v4  ;;  %v5826_v29 = vunpack.i.l.bf16 %v4412_v3  ;;  %v5827_v4 = vunpack.i.l.bf16 %v4410_v23  ;;  %vm5828_vm3 = vmmov %vm5825_vm6  ;;  %vm5829_vm12 = vcmp.lt.s32.totalorder %v3816_v11, 15  ;;  %3177 = vmatpush1.bf16.msk.msra.mxu1 %vm3175_vm2, %v3176_v35  ;;  %v3539_v20 = vpop.permute.xlu1 %3538 }
 0x40d   :  { %v4671_v49 = vsel %vm5825_vm6, %v5824_v47, %v5823_v62  ;;  %v1165_v33 = vsel %vm5829_vm12, %v3531_v51, %v5669_v61  ;;  %v5830_v62 = vpack.c.bf16 %v4370_v41, %v4376_v10  ;;  %vm2349_vm6 = vcmask 261120   ;;  %v3544_v10 = vpop.permute.xlu0 %3543 }
 0x40e   :  { %v4679_v15 = vsel %vm5828_vm3, %v5827_v4, %v5826_v29  ;;  %vm5831_vm3 = vcmp.lt.s32.totalorder %v3816_v11, 16  ;;  %v3446_v29 = vunpack.i.h.bf16 %v4416_v42  ;;  %v1164_v35 = vsel %vm5829_vm12, %v3530_v60, %v5670_v48 }
 0x40f   :  { %3096 = vmatprep.subr.msk.bf16.mxu0 %vm4565_vm0, %v5830_v62  ;;  %v4697_v47 = vsel %vm5831_vm3, %v3440_v32, %v3425_v45  ;;  %v5832_v41 = vpack.c.bf16 %v4442_v40, %v4448_v17  ;;  %v3101_v45 = vpack.c.bf16 %v1165_v33, %v1164_v35  ;;  %v3541_v62 = vunpack.i.h.bf16 %v3539_v20  ;;  %vm3100_vm0 = vmpackc.low %vm4059_vm4, %vm4059_vm4 }
 0x410   :  { %v3540_v61 = vunpack.i.l.bf16 %v3539_v20  ;;  %v3546_v4 = vunpack.i.h.bf16 %v3544_v10  ;;  %v4718_v48 = vsel %vm5831_vm3, %v3441_v53, %v3426_v14  ;;  %v5833_v40 = vunpack.i.l.bf16 %v4404_v63  ;;  %vm5834_vm12 = vmmov %vm5831_vm3  ;;  %v4743_v14 = vld [vmem:[%s5579_s4 + $0x8] ss:$12 sps:$4 sm:$0xff]   ;;  %v3549_v2 = vpop.permute.xlu1 %3548 }
 0x411   :  { %3180 = vmatprep.subr.msk.bf16.mxu1 %vm3172_vm1, %v5832_v41  ;;  %v5835_v17 = vunpack.i.h.bf16 %v4404_v63  ;;  %vm5836_vm14 = vmmov %vm5831_vm3  ;;  %v3545_v35 = vunpack.i.l.bf16 %v3544_v10  ;;  %v5837_v41 = vpack.c.bf16 %v4456_v16, %v4452_v27  ;;  %vm5838_vm3 = vcmp.lt.s32.totalorder %v3816_v11, 1 }
 0x412   :  { %v4724_v8 = vsel %vm5834_vm12, %v5833_v40, %v3440_v32  ;;  %vm3103_vm1 = vmpackc.low %vm4046_vm8, %vm4046_vm8  ;;  %v5840_v16 = vunpack.i.l.bf16 %v4506_v7  ;;  %v5844_v20 = vpack.c.bf16 %v4462_v0, %v4468_v57  ;;  %v4781_v0 = vpop.permute.xlu0 %3553  ;;  %vm5850_vm7 = vcmp.ge.f32.partialorder %v3832_v55, 1.0 }
 0x413   :  { %v4730_v33 = vsel %vm5836_vm14, %v5835_v17, %v3441_v53  ;;  %3099 = vmatpush1.bf16.msk.msra.mxu0 %vm4632_vm11, %v5837_v41  ;;  %v1276_v53 = vsel %vm5838_vm3, %v3540_v61, %v3520_v37  ;;  %vm5839_vm12 = vmmov %vm5838_vm3  ;;  %v3550_v40 = vunpack.i.l.bf16 %v3549_v2  ;;  %v3206_v17 = vpack.c.bf16 %v4599_v30, %v4595_v19 }
 0x414   :  { %v1277_v63 = vsel %vm5839_vm12, %v3541_v62, %v3521_v43  ;;  %vm5841_vm14 = vmmov %vm5838_vm3  ;;  %3183 = vmatpush1.bf16.msk.msra.mxu1 %vm3175_vm2, %v5844_v20  ;;  %3102 = vmatprep.subr.msk.bf16.mxu0 %vm3100_vm0, %v3101_v45  ;;  %v3122_v45 = vpack.c.bf16 %v4653_v39, %v4659_v36  ;;  %v3131_v41 = vpack.c.bf16 %v4671_v49, %v4679_v15  ;;  %vm5865_vm4 = vcmp.lt.s32.totalorder %v3816_v11, 15 }
 0x415   :  { %v1280_v27 = vsel %vm5841_vm14, %v5840_v16, %v3540_v61  ;;  %vm5843_vm11 = vmmov %vm5838_vm3  ;;  %vm5845_vm3 = vcmp.ge.f32.partialorder %v3838_v59, 1.0  ;;  %v3185_v7 = vpack.c.bf16 %v1277_v63, %v1276_v53  ;;  %vm5848_vm14 = vcmp.lt.s32.totalorder %v3816_v11, 15 }
 0x416   :  { %v1281_v32 = vsel %vm5843_vm11, %v5842_v22, %v3541_v62  ;;  %vm4768_vm12 = vmpackc.low %vm5845_vm3, %vm5845_vm3  ;;  %v1169_v61 = vsel %vm5848_vm14, %v3546_v4, %v3531_v51  ;;  %v3551_v62 = vunpack.i.h.bf16 %v3549_v2  ;;  %v3555_v53 = vunpack.i.l.bf16 %v4781_v0  ;;  %v4845_v2 = vpop.permute.xlu0 %3563 }
 0x417   :  { %v3188_v37 = vpack.c.bf16 %v1281_v32, %v1280_v27  ;;  %vm5849_vm11 = vmmov %vm5848_vm14  ;;  %3186 = vmatprep.subr.msk.bf16.mxu1 %vm4768_vm12, %v3185_v7  ;;  %2924 = vmatmul.mubr.msk.bf16.vlgmr.msra.gmra.mxu1 %vm2349_vm6, %v4743_v14  ;;  %v5853_v63 = vunpack.i.h.bf16 %v4410_v23  ;;  %vm5854_vm3 = vcmp.lt.s32.totalorder %v3816_v11, 17  ;;  %v5855_v27 = vunpack.i.l.bf16 %v4410_v23 }
 0x418   :  { %v1168_v57 = vsel %vm5849_vm11, %v3545_v35, %v3530_v60  ;;  %vm4786_vm2 = vmpackc.low %vm5850_vm7, %vm5850_vm7  ;;  %v3556_v60 = vunpack.i.h.bf16 %v4781_v0  ;;  %v5856_v22 = vunpack.i.l.bf16 %v4416_v42  ;;  %vm5858_vm11 = vcmp.lt.s32.totalorder %v3816_v11, 16  ;;  %2471 = vmatprep.mubr.bf16.mxu1 %v4388_v26 }
 0x419   :  { %v3104_v51 = vpack.c.bf16 %v1169_v61, %v1168_v57  ;;  %v4808_v16 = vsel %vm5854_vm3, %v3446_v29, %v5853_v63  ;;  %vm5857_vm14 = vmmov %vm5854_vm3  ;;  %3189 = vmatpush1.bf16.msk.msra.mxu1 %vm4786_vm2, %v3188_v37  ;;  %v3215_v23 = vpack.c.bf16 %v4718_v48, %v4697_v47  ;;  %v5860_v57 = vpack.c.bf16 %v4492_v24, %v4496_v52  ;;  %v3559_v37 = vpop.permute.xlu1 %3558 }
 0x41a   :  { %v4816_v32 = vsel %vm5857_vm14, %v5856_v22, %v5855_v27  ;;  %v1045_v20 = vsel %vm5858_vm11, %v3551_v62, %v3556_v60  ;;  %vm5859_vm7 = vmmov %vm5858_vm11  ;;  %v3561_v27 = vunpack.i.h.bf16 %v3559_v37  ;;  %v3560_v22 = vunpack.i.l.bf16 %v3559_v37 }
 0x41b   :  { %3105 = vmatpush1.bf16.msk.msra.mxu0 %vm3103_vm1, %v3104_v51  ;;  %v1044_v61 = vsel %vm5859_vm7, %v3550_v40, %v3555_v53  ;;  %v5861_v51 = vpack.c.bf16 %v4504_v9, %v4500_v12  ;;  %v3566_v24 = vunpack.i.h.bf16 %v4845_v2  ;;  %vm5862_vm3 = vcmp.ge.f32.partialorder %v3828_v54, 1.0  ;;  %vm3196_vm7 = vmpackc.low %vm4122_vm10, %vm4122_vm10 }
 0x41c   :  { %3108 = vmatprep.subr.msk.bf16.mxu0 %vm3100_vm0, %v5860_v57  ;;  %v3113_v63 = vpack.c.bf16 %v1045_v20, %v1044_v61  ;;  %vm4856_vm14 = vmpackc.low %vm5862_vm3, %vm5862_vm3  ;;  %v3134_v52 = vpack.c.bf16 %v4808_v16, %v4816_v32  ;;  %v3451_v12 = vunpack.i.h.bf16 %v4418_v44  ;;  %v3450_v9 = vunpack.i.l.bf16 %v4418_v44 }
 0x41d   :  { %3192 = vmatprep.subr.msk.bf16.mxu1 %vm4768_vm12, %v5861_v51  ;;  %v3565_v43 = vunpack.i.l.bf16 %v4845_v2  ;;  %v1156_v20 = vsel %vm5865_vm4, %v3560_v22, %v3545_v35  ;;  %vm5866_vm0 = vmmov %vm5865_vm4  ;;  %v5867_v57 = vunpack.i.l.bf16 %v4643_v56  ;;  %v5869_v37 = vunpack.i.h.bf16 %v4643_v56 }
 0x41e   :  { %v1157_v61 = vsel %vm5866_vm0, %v3561_v27, %v3546_v4  ;;  %vm5868_vm12 = vmmov %vm5866_vm0  ;;  %v5871_v44 = vpack.c.bf16 %v4523_v38, %v4527_v31  ;;  %vm5872_vm3 = vcmp.lt.s32.totalorder %v3816_v11, 16  ;;  %v3569_v31 = vpop.permute.xlu1 %3568  ;;  %v4895_v38 = vpop.permute.xlu0 %3573  ;;  %vm5874_vm8 = vcmp.ge.f32.partialorder %v3824_v50, 1.0 }
 0x41f   :  { %v1160_v26 = vsel %vm5868_vm12, %v5867_v57, %v3560_v22  ;;  %vm5870_vm11 = vmmov %vm5866_vm0  ;;  %v3197_v4 = vpack.c.bf16 %v1157_v61, %v1156_v20  ;;  %v1049_v56 = vsel %vm5872_vm3, %v3566_v24, %v3551_v62  ;;  %v5877_v62 = vpack.c.bf16 %v4519_v46, %v4512_v6 }
 0x420   :  { %v1161_v51 = vsel %vm5870_vm11, %v5869_v37, %v3561_v27  ;;  %3111 = vmatpush1.bf16.msk.msra.mxu0 %vm3103_vm1, %v5871_v44  ;;  %vm5873_vm4 = vmmov %vm5872_vm3  ;;  %v3570_v22 = vunpack.i.l.bf16 %v3569_v31  ;;  %v5878_v20 = vunpack.i.l.bf16 %v4416_v42  ;;  %vm5879_vm12 = vcmp.lt.s32.totalorder %v3816_v11, 17 }
 0x421   :  { %v3200_v35 = vpack.c.bf16 %v1161_v51, %v1160_v26  ;;  %v1048_v2 = vsel %vm5873_vm4, %v3565_v43, %v3550_v40  ;;  %3114 = vmatprep.subr.msk.bf16.mxu0 %vm4856_vm14, %v3113_v63  ;;  %vm4900_vm1 = vmpackc.low %vm5874_vm8, %vm5874_vm8  ;;  %3195 = vmatpush1.bf16.msk.msra.mxu1 %vm4786_vm2, %v5877_v62  ;;  %v3571_v40 = vunpack.i.h.bf16 %v3569_v31  ;;  %v5671_v63 = vunpack.i.h.bf16 %v4895_v38 }
 0x422   :  { %v3116_v27 = vpack.c.bf16 %v1049_v56, %v1048_v2  ;;  %vm3199_vm0 = vmpackc.low %vm4110_vm15, %vm4110_vm15  ;;  %v4917_v61 = vsel %vm5879_vm12, %v3450_v9, %v5878_v20  ;;  %v3456_v57 = vunpack.i.h.bf16 %v4420_v21  ;;  %v3455_v6 = vunpack.i.l.bf16 %v4420_v21  ;;  %3198 = vmatprep.subr.msk.bf16.mxu1 %vm3196_vm7, %v3197_v4  ;;  %v5889_v56 = vld [vmem:[#allocation37_spill] sm:$0xff]  ;;  %v3579_v31 = vpop.permute.xlu1 %3578  ;;  %v3584_v62 = vpop.permute.xlu0 %3583 }
 0x423   :  { %v3575_v46 = vunpack.i.l.bf16 %v4895_v38  ;;  %vm5880_vm2 = vmmov %vm5879_vm12  ;;  %v5881_v26 = vunpack.i.l.bf16 %v4412_v3  ;;  %v5883_v21 = vunpack.i.h.bf16 %v4412_v3  ;;  %v3460_v44 = vunpack.i.l.bf16 %v4422_v28 }
 0x424   :  { %v4931_v10 = vsel %vm5880_vm2, %v3451_v12, %v3446_v29  ;;  %vm5882_vm11 = vmmov %vm5880_vm2  ;;  %3117 = vmatpush1.bf16.msk.msra.mxu0 %vm4900_vm1, %v3116_v27  ;;  %v3461_v29 = vunpack.i.h.bf16 %v4422_v28  ;;  %v3581_v20 = vunpack.i.h.bf16 %v3579_v31  ;;  %vm5900_vm10 = vcmp.ge.f32.partialorder %v5899_v34, 1.0 }
 0x425   :  { %v4937_v37 = vsel %vm5882_vm11, %v5881_v26, %v3450_v9  ;;  %vm5884_vm3 = vmmov %vm5880_vm2  ;;  %v5886_v9 = vld [vmem:[#allocation29_spill] sm:$0xff]  ;;  %3201 = vmatpush1.bf16.msk.msra.mxu1 %vm3199_vm0, %v3200_v35  ;;  %v3580_v26 = vunpack.i.l.bf16 %v3579_v31  ;;  %vm5907_vm15 = vcmp.ge.f32.partialorder %v5906_v58, 1.0  ;;  %v5925_v47 = vunpack.i.h.bf16 %v4895_v38 }
 0x426   :  { %v4943_v51 = vsel %vm5884_vm3, %v5883_v21, %v3451_v12  ;;  %vm5885_vm4 = vmmov %vm5880_vm2  ;;  %v3466_v4 = vunpack.i.h.bf16 %v5886_v9  ;;  %v5888_v12 = vld [vmem:[#allocation36_spill] sm:$0xff]  ;;  %v3586_v21 = vunpack.i.h.bf16 %v3584_v62  ;;  %v3589_v36 = vpop.permute.xlu1 %3588 }
 0x427   :  { %v925_v42 = vsel %vm5885_vm4, %v3571_v40, %v5671_v63  ;;  %vm5887_vm8 = vmmov %vm5880_vm2  ;;  %v5890_v2 = vpack.c.bf16 %v5888_v12, %v5889_v56  ;;  %v3465_v12 = vunpack.i.l.bf16 %v5886_v9  ;;  %v3471_v56 = vunpack.i.h.bf16 %v5892_v25 }
 0x428   :  { %v924_v3 = vsel %vm5887_vm8, %v3570_v22, %v3575_v46  ;;  %vm3124_vm12 = vmpackc.low %vm4038_vm13, %vm4038_vm13 }
 0x429   :  { %3120 = vmatprep.subr.msk.bf16.mxu0 %vm4856_vm14, %v5890_v2  ;;  %v3125_v27 = vpack.c.bf16 %v925_v42, %v924_v3  ;;  %v5893_v2 = vld [vmem:[#allocation31_spill] sm:$0xff]  ;;  %v3585_v42 = vunpack.i.l.bf16 %v3584_v62  ;;  %v5894_v3 = vpack.c.bf16 %v4591_v13, %v4579_v1  ;;  %vm5895_vm14 = vcmp.lt.s32.totalorder %v3816_v11, 16  ;;  %vm5903_vm8 = vmmov %vm5885_vm4 }
 0x42a   :  { %v3476_v63 = vunpack.i.h.bf16 %v5893_v2  ;;  %v1036_v35 = vsel %vm5895_vm14, %v3580_v26, %v3565_v43  ;;  %vm5896_vm2 = vmmov %vm5895_vm14  ;;  %3123 = vmatpush1.bf16.msk.msra.mxu0 %vm4900_vm1, %v3122_v45  ;;  %v3594_v45 = vpop.permute.xlu0 %3593  ;;  %vm5905_vm14 = vcmp.lt.s32.totalorder %v3816_v11, 112  ;;  %v3475_v30 = vunpack.i.l.bf16 %v5893_v2 }
 0x42b   :  { %3204 = vmatprep.subr.msk.bf16.mxu1 %vm3196_vm7, %v5894_v3  ;;  %v1037_v31 = vsel %vm5896_vm2, %v3581_v20, %v3566_v24  ;;  %vm5897_vm11 = vmmov %vm5896_vm2  ;;  %v928_v39 = vsel %vm5903_vm8, %v3585_v42, %v3570_v22  ;;  %3126 = vmatprep.subr.msk.bf16.mxu0 %vm3124_vm12, %v3125_v27  ;;  %v3590_v22 = vunpack.i.l.bf16 %v3589_v36  ;;  %v3230_v27 = vpack.c.bf16 %v4943_v51, %v4937_v37 }
 0x42c   :  { %v1040_v62 = vsel %vm5897_vm11, %v3555_v53, %v3580_v26  ;;  %vm5898_vm3 = vmmov %vm5896_vm2  ;;  %v3227_v53 = vpack.c.bf16 %v4931_v10, %v4917_v61  ;;  %v3209_v0 = vpack.c.bf16 %v1037_v31, %v1036_v35  ;;  %3207 = vmatpush1.bf16.msk.msra.mxu1 %vm3199_vm0, %v3206_v17  ;;  %v3470_v26 = vunpack.i.l.bf16 %v5892_v25 }
 0x42d   :  { %v1041_v13 = vsel %vm5898_vm3, %v3556_v60, %v3581_v20  ;;  %vm5002_vm7 = vmpackc.low %vm5900_vm10, %vm5900_vm10  ;;  %v929_v60 = vsel %vm5885_vm4, %v3586_v21, %v3571_v40  ;;  %v3591_v40 = vunpack.i.h.bf16 %v3589_v36  ;;  %v5034_v20 = vsel %vm5905_vm14, %v3455_v6, %v3460_v44 }
 0x42e   :  { %vm3127_vm1 = vmpackc.low %vm4029_vm9, %vm4029_vm9  ;;  %v3212_v43 = vpack.c.bf16 %v1041_v13, %v1040_v62  ;;  %v3128_v18 = vpack.c.bf16 %v929_v60, %v928_v39  ;;  %3210 = vmatprep.subr.msk.bf16.mxu1 %vm5002_vm7, %v3209_v0  ;;  %vm5913_vm10 = vcmp.lt.s32.totalorder %v3816_v11, 113  ;;  %v3596_v62 = vunpack.i.h.bf16 %v3594_v45  ;;  %v5088_v0 = vpop.permute.xlu1 %3598  ;;  %v5090_v60 = vpop.permute.xlu0 %3603 }
 0x42f   :  { %vm5043_vm0 = vmpackc.low %vm5907_vm15, %vm5907_vm15  ;;  %v5069_v31 = vsel %vm5913_vm10, %v3471_v56, %v3476_v63  ;;  %v3595_v13 = vunpack.i.l.bf16 %v3594_v45  ;;  %v3606_v39 = vunpack.i.h.bf16 %v5090_v60  ;;  %v3605_v49 = vunpack.i.l.bf16 %v5090_v60 }
 0x430   :  { %vm5910_vm2 = vmmov %vm5905_vm14  ;;  %3129 = vmatpush1.bf16.msk.msra.mxu0 %vm3127_vm1, %v3128_v18  ;;  %3213 = vmatpush1.bf16.msk.msra.mxu1 %vm5043_vm0, %v3212_v43  ;;  %vm5926_vm9 = vcmp.lt.f32.partialorder %v3824_v50, 15.0 }
 0x431   :  { %v1695_v17 = vsel %vm5910_vm2, %v3456_v57, %v3461_v29  ;;  %vm5911_vm11 = vmmov %vm5910_vm2  ;;  %3132 = vmatprep.subr.msk.bf16.mxu0 %vm3124_vm12, %v3131_v41  ;;  %v5916_v41 = vld [vmem:[#allocation32_spill] sm:$0xff]  ;;  %3216 = vmatprep.subr.msk.bf16.mxu1 %vm5002_vm7, %v3215_v23  ;;  %vm5922_vm7 = vcmp.lt.f32.partialorder %v3828_v54, 15.0  ;;  %v921_v23 = vsel %vm5885_vm4, %v5925_v47, %v3591_v40 }
 0x432   :  { %v5055_v3 = vsel %vm5911_vm11, %v3465_v12, %v3455_v6  ;;  %vm5912_vm3 = vmmov %vm5910_vm2  ;;  %v916_v6 = vsel %vm5885_vm4, %v3590_v22, %v3585_v42  ;;  %v3600_v42 = vunpack.i.l.bf16 %v5088_v0  ;;  %v3481_v7 = vunpack.i.h.bf16 %v5916_v41 }
 0x433   :  { %v5061_v35 = vsel %vm5912_vm3, %v3466_v4, %v3456_v57  ;;  %vm5914_vm8 = vmmov %vm5885_vm4  ;;  %v3480_v36 = vunpack.i.l.bf16 %v5916_v41 }
 0x434   :  { %v917_v57 = vsel %vm5914_vm8, %v3591_v40, %v3586_v21  ;;  %v3601_v21 = vunpack.i.h.bf16 %v5088_v0  ;;  %vm5915_vm13 = vmmov %vm5913_vm10  ;;  %3135 = vmatpush1.bf16.msk.msra.mxu0 %vm3127_vm1, %v3134_v52  ;;  %v5929_v52 = vpack.c.bf16 %v4730_v33, %v4724_v8  ;;  %v3146_v50 = vpack.c.bf16 %v5061_v35, %v5055_v3  ;;  %v5931_v8 = vld [vmem:[#allocation17_spill] sm:$0xff] }
 0x435   :  { %v5104_v15 = vsel %vm5915_vm13, %v3470_v26, %v3475_v30  ;;  %vm5917_vm12 = vmmov %vm5885_vm4  ;;  %v3221_v1 = vpack.c.bf16 %v917_v57, %v916_v6  ;;  %v3143_v57 = vpack.c.bf16 %v1695_v17, %v5034_v20  ;;  %v5200_v35 = vsel %vm5910_vm2, %v3461_v29, %v3481_v7 }
 0x436   :  { %v920_v45 = vsel %vm5917_vm12, %v3575_v46, %v3590_v22  ;;  %vm3220_vm14 = vmpackc.low %vm4083_vm5, %vm4083_vm5  ;;  %v1697_v0 = vsel %vm5910_vm2, %v3596_v62, %v3601_v21  ;;  %v3609_v22 = vpop.permute.xlu1 %3608  ;;  %3219 = vmatpush1.bf16.msk.msra.mxu1 %vm5043_vm0, %v5929_v52  ;;  %vm5932_vm0 = vnez %v5931_v8  ;;  %v3155_v33 = vpack.c.bf16 %v5069_v31, %v5104_v15 }
 0x437   :  { %vm5919_vm15 = vmmov %vm5910_vm2  ;;  %v3611_v38 = vunpack.i.h.bf16 %v3609_v22  ;;  %v3610_v24 = vunpack.i.l.bf16 %v3609_v22  ;;  %3222 = vmatprep.subr.msk.bf16.mxu1 %vm3220_vm14, %v3221_v1  ;;  %v3224_v20 = vpack.c.bf16 %v921_v23, %v920_v45 }
 0x438   :  { %v1696_v18 = vsel %vm5919_vm15, %v3595_v13, %v3600_v42  ;;  %vm5920_vm11 = vmmov %vm5910_vm2 }
 0x439   :  { %v1700_v60 = vsel %vm5920_vm11, %v3605_v49, %v3595_v13  ;;  %vm5921_vm3 = vmmov %vm5910_vm2  ;;  %v3137_v16 = vpack.c.bf16 %v1697_v0, %v1696_v18  ;;  %v5930_v13 = vld [vmem:[#allocation33_spill] sm:$0xff] }
 0x43a   :  { %v1701_v46 = vsel %vm5921_vm3, %v3606_v39, %v3596_v62  ;;  %vm5139_vm10 = vmpackc.low %vm5922_vm7, %vm5922_vm7  ;;  %v5147_v62 = vpop.permute.xlu0 %3613  ;;  %v3486_v41 = vunpack.i.h.bf16 %v5930_v13  ;;  %v3485_v18 = vunpack.i.l.bf16 %v5930_v13  ;;  %v3619_v45 = vpop.permute.xlu1 %3618 }
 0x43b   :  { %v3140_v32 = vpack.c.bf16 %v1701_v46, %v1700_v60  ;;  %vm5152_vm1 = vmpackc.low %vm5926_vm9, %vm5926_vm9  ;;  %v3616_v40 = vunpack.i.h.bf16 %v5147_v62  ;;  %v3615_v6 = vunpack.i.l.bf16 %v5147_v62  ;;  %3138 = vmatprep.subr.msk.bf16.mxu0 %vm5139_vm10, %v3137_v16  ;;  %v3621_v28 = vunpack.i.h.bf16 %v3619_v45 }
 0x43c   :  { %vm3223_vm8 = vmpackc.low %vm5932_vm0, %vm5932_vm0  ;;  %v3620_v29 = vunpack.i.l.bf16 %v3619_v45 }
 0x43d   :  { %v1577_v19 = vsel %vm5915_vm13, %v3611_v38, %v3616_v40  ;;  %vm5933_vm12 = vmmov %vm5915_vm13  ;;  %3141 = vmatpush2.bf16.msk.msra.mxu0 %vm5152_vm1, %v3140_v32  ;;  %3225 = vmatpush1.bf16.msk.msra.mxu1 %vm3223_vm8, %v3224_v20  ;;  %v1705_v48 = vsel %vm5910_vm2, %v3621_v28, %v3606_v39  ;;  %v5952_v32 = vld [vmem:[#allocation35_spill] sm:$0xff] }
 0x43e   :  { %v1576_v17 = vsel %vm5933_vm12, %v3610_v24, %v3615_v6  ;;  %vm5934_vm15 = vmmov %vm5910_vm2  ;;  %v3624_v0 = vpop.permute.xlu0 %3623  ;;  %3144 = vmatprep.subr.msk.bf16.mxu0 %vm5139_vm10, %v3143_v57  ;;  %3228 = vmatprep.subr.msk.bf16.mxu1 %vm3220_vm14, %v3227_v53  ;;  %v3496_v22 = vunpack.i.h.bf16 %v5952_v32  ;;  %v3495_v54 = vunpack.i.l.bf16 %v5952_v32  ;;  %v6010_v32 = vld [vmem:[#allocation10_spill] sm:$0xff] }
 0x43f   :  { %v5194_v3 = vsel %vm5934_vm15, %v3460_v44, %v3480_v36  ;;  %vm5935_vm11 = vmmov %vm5910_vm2  ;;  %v3626_v44 = vunpack.i.h.bf16 %v3624_v0  ;;  %v3149_v46 = vpack.c.bf16 %v1577_v19, %v1576_v17  ;;  %v5958_v17 = vld [vmem:[#allocation6_spill] sm:$0xff] }
 0x440   :  { %v1702_v31 = vsel %vm5935_vm11, %v3480_v36, %v3465_v12  ;;  %vm5936_vm3 = vmmov %vm5910_vm2  ;;  %v3625_v12 = vunpack.i.l.bf16 %v3624_v0  ;;  %v5937_v36 = vld [vmem:[#allocation12_spill] sm:$0xff]  ;;  %vm5945_vm11 = vcmp.lt.f32.partialorder %v5899_v34, 15.0  ;;  %v5950_v34 = vld [vmem:[#allocation13_spill] sm:$0xff] }
 0x441   :  { %v1703_v15 = vsel %vm5936_vm3, %v3481_v7, %v3466_v4  ;;  %vm5938_vm7 = vnez %v5937_v36  ;;  %vm5939_vm10 = vmmov %vm5933_vm12  ;;  %v5941_v7 = vld [vmem:[#allocation34_spill] sm:$0xff]  ;;  %3147 = vmatpush2.bf16.msk.msra.mxu0 %vm5152_vm1, %v3146_v50  ;;  %vm5951_vm1 = vnez %v5950_v34  ;;  %3231 = vmatpush1.bf16.msk.msra.mxu1 %vm3223_vm8, %v3230_v27  ;;  %vm5956_vm8 = vcmp.lt.s32.totalorder %v3816_v11, 127 }
 0x442   :  { %vm3148_vm4 = vmpackc.low %vm5938_vm7, %vm5938_vm7  ;;  %v1579_v9 = vsel %vm5939_vm10, %v3486_v41, %v3471_v56  ;;  %v3491_v60 = vunpack.i.h.bf16 %v5941_v7  ;;  %v5262_v39 = vpop.permute.xlu0 %3633  ;;  %v3490_v16 = vunpack.i.l.bf16 %v5941_v7  ;;  %v3239_v27 = vpack.c.bf16 %v1703_v15, %v1702_v31  ;;  %v5968_v36 = vld [vmem:[#allocation14_spill] sm:$0xff] }
 0x443   :  { %vm5940_vm9 = vmmov %vm5939_vm10  ;;  %3150 = vmatprep.subr.msk.bf16.mxu0 %vm3148_vm4, %v3149_v46  ;;  %v3636_v1 = vunpack.i.h.bf16 %v5262_v39  ;;  %v3635_v52 = vunpack.i.l.bf16 %v5262_v39 }
 0x444   :  { %v1578_v4 = vsel %vm5940_vm9, %v3485_v18, %v3470_v26  ;;  %vm5942_vm13 = vmmov %vm5910_vm2 }
 0x445   :  { %v1692_v25 = vsel %vm5942_vm13, %v3600_v42, %v3620_v29  ;;  %vm5943_vm12 = vmmov %vm5910_vm2  ;;  %v3158_v50 = vpack.c.bf16 %v1579_v9, %v1578_v4  ;;  %v5972_v4 = vld [vmem:[#allocation5_spill] sm:$0xff] }
 0x446   :  { %v1693_v56 = vsel %vm5943_vm12, %v3601_v21, %v3621_v28  ;;  %vm5944_vm15 = vmmov %vm5910_vm2  ;;  %v3649_v57 = vpop.permute.xlu0 %3648  ;;  %vm5959_vm12 = vcmp.lt.f32.partialorder %v5958_v17, 15.0  ;;  %v5998_v17 = vld [vmem:[#allocation38_spill] sm:$0xff] }
 0x447   :  { %v1704_v26 = vsel %vm5944_vm15, %v3620_v29, %v3605_v49  ;;  %vm5254_vm5 = vmpackc.low %vm5945_vm11, %vm5945_vm11  ;;  %v3236_v53 = vpack.c.bf16 %v1693_v56, %v1692_v25  ;;  %v3629_v49 = vpop.permute.xlu1 %3628  ;;  %v3651_v19 = vunpack.i.h.bf16 %v3649_v57  ;;  %v3650_v15 = vunpack.i.l.bf16 %v3649_v57 }
 0x448   :  { %v3233_v10 = vpack.c.bf16 %v1705_v48, %v1704_v26  ;;  %vm5948_vm14 = vmmov %vm5940_vm9  ;;  %v3631_v47 = vunpack.i.h.bf16 %v3629_v49  ;;  %v3630_v23 = vunpack.i.l.bf16 %v3629_v49 }
 0x449   :  { %v1581_v21 = vsel %vm5948_vm14, %v3626_v44, %v3611_v38  ;;  %vm5949_vm3 = vmmov %vm5940_vm9  ;;  %vm5953_vm9 = vcmp.lt.f32.partialorder %v5906_v58, 15.0  ;;  %v3242_v58 = vpack.c.bf16 %v5200_v35, %v5194_v3  ;;  %v5999_v3 = vunpack.i.h.bf16 %v5998_v17 }
 0x44a   :  { %v1580_v42 = vsel %vm5949_vm3, %v3625_v12, %v3610_v24  ;;  %vm3151_vm10 = vmpackc.low %vm5951_vm1, %vm5951_vm1  ;;  %3234 = vmatprep.subr.msk.bf16.mxu1 %vm5254_vm5, %v3233_v10  ;;  %v1457_v51 = vsel %vm5956_vm8, %v3631_v47, %v3636_v1  ;;  %vm5973_vm1 = vcmp.lt.f32.partialorder %v5972_v4, 15.0 }
 0x44b   :  { %v3152_v43 = vpack.c.bf16 %v1581_v21, %v1580_v42  ;;  %vm5290_vm0 = vmpackc.low %vm5953_vm9, %vm5953_vm9  ;;  %v3639_v24 = vpop.permute.xlu1 %3638 }
 0x44c   :  { %vm5957_vm13 = vmmov %vm5956_vm8  ;;  %3237 = vmatpush2.bf16.msk.msra.mxu1 %vm5290_vm0, %v3236_v53  ;;  %v3641_v8 = vunpack.i.h.bf16 %v3639_v24  ;;  %v3640_v20 = vunpack.i.l.bf16 %v3639_v24  ;;  %v5976_v53 = vld [vmem:[#allocation11_spill] sm:$0xff] }
 0x44d   :  { %3153 = vmatpush2.bf16.msk.msra.mxu0 %vm3151_vm10, %v3152_v43  ;;  %v1456_v38 = vsel %vm5957_vm13, %v3630_v23, %v3635_v52  ;;  %vm5319_vm15 = vmpackc.low %vm5959_vm12, %vm5959_vm12  ;;  %3240 = vmatprep.subr.msk.bf16.mxu1 %vm5254_vm5, %v3239_v27  ;;  %vm5969_vm5 = vnez %v5968_v36  ;;  %vm5977_vm12 = vnez %v5976_v53  ;;  %v6007_v36 = vunpack.i.l.bf16 %v4605_v5 }
 0x44e   :  { %3156 = vmatprep.subr.msk.bf16.mxu0 %vm3148_vm4, %v3155_v33  ;;  %vm5962_vm7 = vmmov %vm5956_vm8  ;;  %v3161_v31 = vpack.c.bf16 %v1457_v51, %v1456_v38 }
 0x44f   :  { %v1455_v33 = vsel %vm5962_vm7, %v3491_v60, %v3496_v22  ;;  %vm5963_vm4 = vmmov %vm5962_vm7  ;;  %v3644_v9 = vpop.permute.xlu1 %3643 }
 0x450   :  { %v1454_v35 = vsel %vm5963_vm4, %v3490_v16, %v3495_v54  ;;  %vm5964_vm2 = vmmov %vm5949_vm3  ;;  %3243 = vmatpush2.bf16.msk.msra.mxu1 %vm5290_vm0, %v3242_v58  ;;  %v3646_v56 = vunpack.i.h.bf16 %v3644_v9  ;;  %v3645_v26 = vunpack.i.l.bf16 %v3644_v9  ;;  %v6012_v9 = vld [vmem:[#allocation28_spill] sm:$0xff] }
 0x451   :  { %v1572_v45 = vsel %vm5964_vm2, %v3615_v6, %v3640_v20  ;;  %vm5965_vm11 = vmmov %vm5964_vm2  ;;  %3159 = vmatpush2.bf16.msk.msra.mxu0 %vm3151_vm10, %v3158_v50  ;;  %v3167_v61 = vpack.c.bf16 %v1455_v33, %v1454_v35  ;;  %v6001_v35 = vunpack.i.h.bf16 %v4605_v5  ;;  %v3695_v5 = vld [vmem:[%s5579_s4] ss:$12 sps:$4 sm:$0xff]   ;;  %v6015_v46 = vunpack.i.h.bf16 %v6012_v9 }
 0x452   :  { %v1573_v0 = vsel %vm5965_vm11, %v3616_v40, %v3641_v8  ;;  %vm5966_vm14 = vmmov %vm5964_vm2  ;;  %3162 = vmatprep.subr.msk.bf16.mxu0 %vm5319_vm15, %v3161_v31 }
 0x453   :  { %v1584_v28 = vsel %vm5966_vm14, %v3640_v20, %v3625_v12  ;;  %vm5967_vm3 = vmmov %vm5964_vm2  ;;  %v3248_v6 = vpack.c.bf16 %v1573_v0, %v1572_v45  ;;  %v6003_v45 = vld [vmem:[#allocation20_spill] sm:$0xff] }
 0x454   :  { %v1585_v29 = vsel %vm5967_vm3, %v3641_v8, %v3626_v44  ;;  %vm3244_vm9 = vmpackc.low %vm5969_vm5, %vm5969_vm5  ;;  %v3654_v44 = vpop.permute.xlu0 %3653  ;;  %vm5988_vm5 = vcmp.lt.f32.partialorder %v3838_v59, 15.0 }
 0x455   :  { %v3245_v62 = vpack.c.bf16 %v1585_v29, %v1584_v28  ;;  %vm5970_vm8 = vmmov %vm5963_vm4  ;;  %v3656_v48 = vunpack.i.h.bf16 %v3654_v44  ;;  %v3655_v10 = vunpack.i.l.bf16 %v3654_v44  ;;  %v6005_v28 = vunpack.i.l.bf16 %v5998_v17 }
 0x456   :  { %v1461_v40 = vsel %vm5970_vm8, %v3651_v19, %v3631_v47  ;;  %vm5971_vm13 = vmmov %vm5963_vm4  ;;  %v3659_v47 = vpop.permute.xlu1 %3658  ;;  %v6013_v44 = vunpack.i.l.bf16 %v6012_v9 }
 0x457   :  { %v1460_v12 = vsel %vm5971_vm13, %v3650_v15, %v3630_v23  ;;  %vm5364_vm10 = vmpackc.low %vm5973_vm1, %vm5973_vm1  ;;  %3246 = vmatprep.subr.msk.bf16.mxu1 %vm3244_vm9, %v3245_v62  ;;  %v3660_v7 = vunpack.i.l.bf16 %v3659_v47 }
 0x458   :  { %v3164_v25 = vpack.c.bf16 %v1461_v40, %v1460_v12  ;;  %vm3247_vm7 = vmpackc.low %vm5977_vm12, %vm5977_vm12  ;;  %vm6000_vm12 = vcmp.lt.s32.totalorder %v3816_v11, 111  ;;  %v6029_v11 = vld [vmem:[#allocation26_spill] sm:$0xff] }
 0x459   :  { %vm5978_vm4 = vmmov %vm5964_vm2  ;;  %3249 = vmatpush2.bf16.msk.msra.mxu1 %vm3247_vm7, %v3248_v6  ;;  %v6009_v6 = vld [vmem:[#allocation21_spill] sm:$0xff] }
 0x45a   :  { %v1570_v21 = vsel %vm5978_vm4, %v3475_v30, %v3645_v26  ;;  %vm5979_vm0 = vmmov %vm5964_vm2  ;;  %3165 = vmatpush2.bf16.msk.msra.mxu0 %vm5364_vm10, %v3164_v25 }
 0x45b   :  { %v1571_v42 = vsel %vm5979_vm0, %v3476_v63, %v3646_v56  ;;  %vm5980_vm2 = vmmov %vm5979_vm0  ;;  %3168 = vmatprep.subr.msk.bf16.mxu0 %vm5319_vm15, %v3167_v61 }
 0x45c   :  { %v1582_v49 = vsel %vm5980_vm2, %v3645_v26, %v3485_v18  ;;  %vm5981_vm11 = vmmov %vm5979_vm0  ;;  %v3254_v30 = vpack.c.bf16 %v1571_v42, %v1570_v21  ;;  %v3664_v18 = vpop.permute.xlu0 %3663  ;;  %vm5995_vm2 = vcmp.lt.f32.partialorder %v3832_v55, 15.0  ;;  %v6018_v26 = vld [vmem:[#allocation9_spill] sm:$0xff] }
 0x45d   :  { %v1583_v34 = vsel %vm5981_vm11, %v3646_v56, %v3486_v41  ;;  %vm5982_vm14 = vmmov %vm5970_vm8  ;;  %v3661_v41 = vunpack.i.h.bf16 %v3659_v47  ;;  %v3666_v23 = vunpack.i.h.bf16 %v3664_v18  ;;  %v3665_v37 = vunpack.i.l.bf16 %v3664_v18  ;;  %v6017_v56 = vld [vmem:[#allocation22_spill] sm:$0xff] }
 0x45e   :  { %v3251_v43 = vpack.c.bf16 %v1583_v34, %v1582_v49  ;;  %v1459_v63 = vsel %vm5982_vm14, %v3656_v48, %v3491_v60  ;;  %vm5983_vm3 = vmmov %vm5970_vm8  ;;  %v6025_v49 = vld [vmem:[#allocation23_spill] sm:$0xff]  ;;  %v6026_v34 = vmov 0  }
 0x45f   :  { %v1458_v2 = vsel %vm5983_vm3, %v3655_v10, %v3490_v16  ;;  %vm5984_vm15 = vmmov %vm5983_vm3 }
 0x460   :  { %v3170_v13 = vpack.c.bf16 %v1459_v63, %v1458_v2  ;;  %3252 = vmatprep.subr.msk.bf16.mxu1 %vm3244_vm9, %v3251_v43  ;;  %v1452_v60 = vsel %vm5984_vm15, %v3635_v52, %v3660_v7  ;;  %vm5985_vm8 = vmmov %vm5983_vm3  ;;  %v3669_v52 = vpop.permute.xlu1 %3668  ;;  %v3674_v38 = vpop.permute.xlu0 %3673  ;;  %v6028_v63 = vld [vmem:[#allocation25_spill] sm:$0xff] }
 0x461   :  { %v1453_v16 = vsel %vm5985_vm8, %v3636_v1, %v3661_v41  ;;  %vm5986_vm13 = vmmov %vm5983_vm3  ;;  %v5991_v1 = vld [vmem:[#allocation19_spill] sm:$0xff]  ;;  %3255 = vmatpush2.bf16.msk.msra.mxu1 %vm3247_vm7, %v3254_v30  ;;  %v3671_v59 = vunpack.i.h.bf16 %v3669_v52  ;;  %v3670_v20 = vunpack.i.l.bf16 %v3669_v52  ;;  %v3676_v31 = vunpack.i.h.bf16 %v3674_v38  ;;  %v6027_v30 = vld [vmem:[#allocation24_spill] sm:$0xff] }
 0x462   :  { %v1464_v51 = vsel %vm5986_vm13, %v3660_v7, %v3650_v15  ;;  %vm5987_vm1 = vmmov %vm5983_vm3  ;;  %3171 = vmatpush2.bf16.msk.msra.mxu0 %vm5364_vm10, %v3170_v13  ;;  %v3260_v24 = vpack.c.bf16 %v1453_v16, %v1452_v60  ;;  %v3675_v15 = vunpack.i.l.bf16 %v3674_v38  ;;  %vm6011_vm8 = vnez %v6010_v32 }
 0x463   :  { %v1465_v27 = vsel %vm5987_vm1, %v3661_v41, %v3651_v19  ;;  %vm5431_vm9 = vmpackc.low %vm5988_vm5, %vm5988_vm5  ;;  %2381 = vmatprep.subr.bf16.mxu0 %v5991_v1  ;;  %v1813_v33 = vsel %vm6000_vm12, %v5999_v3, %v3671_v59 }
 0x464   :  { %v3257_v39 = vpack.c.bf16 %v1465_v27, %v1464_v51  ;;  %vm5992_vm4 = vmmov %vm5987_vm1 }
 0x465   :  { %v1462_v57 = vsel %vm5992_vm4, %v3665_v37, %v3655_v10  ;;  %vm5993_vm0 = vmmov %vm5987_vm1 }
 0x466   :  { %v1463_v50 = vsel %vm5993_vm0, %v3666_v23, %v3656_v48  ;;  %vm5994_vm10 = vmmov %vm5993_vm0  ;;  %3258 = vmatprep.subr.msk.bf16.mxu1 %vm5431_vm9, %v3257_v39  ;;  %2382 = vmatpush2.bf16.msra.mxu0 %v6003_v45  ;;  %v6020_v48 = vld [vmem:[#allocation27_spill] sm:$0xff] }
 0x467   :  { %v1450_v8 = vsel %vm5994_vm10, %v3495_v54, %v3665_v37  ;;  %vm5454_vm11 = vmpackc.low %vm5995_vm2, %vm5995_vm2  ;;  %v3263_v0 = vpack.c.bf16 %v1463_v50, %v1462_v57  ;;  %2383 = vmatprep.subr.bf16.mxu0 %v6009_v6  ;;  %v6021_v61 = vunpack.i.l.bf16 %v6020_v48  ;;  %v6023_v53 = vunpack.i.h.bf16 %v6020_v48 }
 0x468   :  { %vm6002_vm7 = vmmov %vm6000_vm12  ;;  %3261 = vmatpush2.bf16.msk.msra.mxu1 %vm5454_vm11, %v3260_v24 }
 0x469   :  { %v1825_v54 = vsel %vm6002_vm7, %v3671_v59, %v6001_v35  ;;  %vm6004_vm14 = vmmov %vm5993_vm0  ;;  %3264 = vmatprep.subr.msk.bf16.mxu1 %vm5431_vm9, %v3263_v0  ;;  %vm6019_vm9 = vnez %v6018_v26 }
 0x46a   :  { %v1451_v55 = vsel %vm6004_vm14, %v3496_v22, %v3666_v23  ;;  %vm6006_vm3 = vmmov %vm6002_vm7  ;;  %2384 = vmatpush2.bf16.msra.mxu0 %v6017_v56 }
 0x46b   :  { %v1812_v29 = vsel %vm6006_vm3, %v6005_v28, %v3670_v20  ;;  %vm6008_vm15 = vmmov %vm6006_vm3  ;;  %v3266_v12 = vpack.c.bf16 %v1451_v55, %v1450_v8 }
 0x46c   :  { %v1824_v62 = vsel %vm6008_vm15, %v3670_v20, %v6007_v36  ;;  %v3272_v40 = vpack.c.bf16 %v1813_v33, %v1812_v29  ;;  %vm3268_vm13 = vmpackc.low %vm6011_vm8, %vm6011_vm8 }
 0x46d   :  { %v3269_v22 = vpack.c.bf16 %v1825_v54, %v1824_v62  ;;  %vm6014_vm1 = vmmov %vm6006_vm3  ;;  %3267 = vmatpush2.bf16.msk.msra.mxu1 %vm5454_vm11, %v3266_v12  ;;  %2386 = vmatmul.mubr.bf16.vlgmr.msra.gmra.mxu0 %v3695_v5 }
 0x46e   :  { %v1822_v4 = vsel %vm6014_vm1, %v3675_v15, %v6013_v44  ;;  %vm6016_vm5 = vmmov %vm6014_vm1  ;;  %2467 = vmatprep.subr.bf16.mxu1 %v6025_v49  ;;  %2514 = vmatprep.mubr.bf16.mxu0 %v6026_v34 }
 0x46f   :  { %v1823_v25 = vsel %vm6016_vm5, %v3676_v31, %v6015_v46  ;;  %3270 = vmatprep.subr.msk.bf16.mxu0 %vm3268_vm13, %v3269_v22  ;;  %vm3271_vm4 = vmpackc.low %vm6019_vm9, %vm6019_vm9 }
 0x470   :  { %vm6022_vm0 = vmmov %vm6014_vm1  ;;  %v3275_v42 = vpack.c.bf16 %v1823_v25, %v1822_v4  ;;  %3273 = vmatpush1.bf16.msk.msra.mxu0 %vm3271_vm4, %v3272_v40 }
 0x471   :  { %v1810_v10 = vsel %vm6022_vm0, %v6021_v61, %v3675_v15  ;;  %vm6024_vm10 = vmmov %vm6022_vm0  ;;  %2468 = vmatpush2.bf16.msra.mxu1 %v6027_v30 }
 0x472   :  { %v1811_v21 = vsel %vm6024_vm10, %v6023_v53, %v3676_v31  ;;  %3276 = vmatprep.subr.msk.bf16.mxu0 %vm3268_vm13, %v3275_v42  ;;  %2469 = vmatprep.subr.bf16.mxu1 %v6028_v63 }
 0x473   :  { %v3278_v43 = vpack.c.bf16 %v1811_v21, %v1810_v10  ;;  %v14_v21 = vstv %s5580_s8 }
 0x474   :  { %15 = vst [vmem:[#allocation4] sm:$0x1] %v14_v21  ;;  %v6030_v21 = vlaneseq }
 0x475   :  { %3279 = vmatpush1.bf16.msk.msra.mxu0 %vm3271_vm4, %v3278_v43  ;;  %2470 = vmatpush2.bf16.msra.mxu1 %v6029_v11  ;;  %v2565_v11 = vld [vmem:[%s5581_s5] sm:$0xff] }
 0x478   :  { %2925 = vmatmul.mubr.msk.bf16.vlgmr.msra.gmra.mxu0 %vm2349_vm6, %v4743_v14  ;;  %2472 = vmatmul.mubr.bf16.vlgmr.msra.gmra.mxu1 %v3695_v5  ;;  %vm2732_vm6 = vcmp.lt.s32.totalorder %v6030_v21, 512 }
 0x4d7   :  { %v2430_v2 = vpop.f32.mrf.mxu1 }
 0x4d9   :  { %v2432_v47 = vpop.f32.mrf.mxu1 }
 0x4db   :  { %v2434_v41 = vpop.f32.mrf.mxu1 }
 0x4dd   :  { %v2436_v60 = vpop.f32.mrf.mxu1 }
 0x52d   :  { %v2387_v18 = vpop.f32.mrf.mxu0 }
 0x52e   :  { %v2431_v51 = vadd.f32 %v2430_v2, %v2387_v18  ;;  %v2566_v18 = vld [vmem:[%s5581_s5 + $0x8] sm:$0xff] }
 0x52f   :  { %v2389_v13 = vpop.f32.mrf.mxu0 }
 0x530   :  { %v2433_v37 = vadd.f32 %v2432_v47, %v2389_v13 }
 0x531   :  { %v2391_v7 = vpop.f32.mrf.mxu0 }
 0x532   :  { %v2525_v39 = vadd.f32 %v2433_v37, %v2431_v51  ;;  %v2435_v14 = vadd.f32 %v2434_v41, %v2391_v7  ;;  %v2592_v41 = vld [vmem:[%s5582_s6 + $0x8] sm:$0xff] }
 0x533   :  { %v2393_v23 = vpop.f32.mrf.mxu0 }
 0x534   :  { %v2437_v52 = vadd.f32 %v2436_v60, %v2393_v23  ;;  %v2591_v23 = vld [vmem:[%s5582_s6] sm:$0xff] }
 0x535   :  { %v2619_v60 = vld [vmem:[%s5583_s7] sm:$0xff] }
 0x536   :  { %v2530_v20 = vadd.f32 %v2437_v52, %v2435_v14 }
 0x538   :  { %v2516_v16 = vpop.f32.mrf.mxu0  ;;  %v2473_v27 = vpop.f32.mrf.mxu1 }
 0x539   :  { %v2517_v38 = vadd.f32 %v2516_v16, %v2473_v27  ;;  %v2667_v16 = vld [vmem:[#allocation4] sm:$0x1] }
 0x53a   :  { %v2518_v58 = vpop.f32.mrf.mxu0  ;;  %v2475_v1 = vpop.f32.mrf.mxu1 }
 0x53b   :  { %v2526_v57 = vadd.f32 %v2525_v39, %v2517_v38  ;;  %v2519_v50 = vadd.f32 %v2518_v58, %v2475_v1 }
 0x53c   :  { %v2520_v24 = vpop.f32.mrf.mxu0  ;;  %v2477_v59 = vpop.f32.mrf.mxu1 }
 0x53d   :  { %v2527_v19 = vadd.f32 %v2526_v57, %v2519_v50  ;;  %v2521_v17 = vadd.f32 %v2520_v24, %v2477_v59 }
 0x53e   :  { %v2522_v8 = vpop.f32.mrf.mxu0  ;;  %v2479_v3 = vpop.f32.mrf.mxu1 }
 0x53f   :  { %v2531_v33 = vadd.f32 %v2530_v20, %v2521_v17  ;;  %v2523_v35 = vadd.f32 %v2522_v8, %v2479_v3  ;;  %2528 = vadd.xlane.f32.xlu1 %v2527_v19 }
 0x541   :  { %v2532_v54 = vadd.f32 %v2531_v33, %v2523_v35 }
 0x543   :  { %2533 = vadd.xlane.f32.xlu0 %v2532_v54 }
 0x5c8   :  { %v2529_v31 = vpop.xlane.xlu1 %2528 }
 0x5c9   :  { %v2535_v15 = vmul.f32 0.001953125, %v2529_v31 }
 0x5cb   :  { %v5529_v45 = vsub.f32 %v2431_v51, %v2535_v15  ;;  %v5531_v55 = vsub.f32 %v2433_v37, %v2535_v15  ;;  %v5533_v0 = vsub.f32 %v2517_v38, %v2535_v15  ;;  %v5535_v29 = vsub.f32 %v2519_v50, %v2535_v15  ;;  %v2620_v37 = vld [vmem:[%s5583_s7 + $0x8] sm:$0xff] }
 0x5cc   :  { %v2534_v28 = vpop.xlane.xlu0 %2533 }
 0x5cd   :  { %v2536_v36 = vmul.f32 0.001953125, %v2534_v28  ;;  %v2545_v62 = vmul.f32 %v5529_v45, %v5529_v45  ;;  %v2546_v6 = vmul.f32 %v5531_v55, %v5531_v55  ;;  %v2547_v40 = vmul.f32 %v5533_v0, %v5533_v0 }
 0x5ce   :  { %v2548_v9 = vmul.f32 %v5535_v29, %v5535_v29 }
 0x5cf   :  { %v2541_v32 = vsub.f32 %v2435_v14, %v2536_v36  ;;  %v2542_v22 = vsub.f32 %v2437_v52, %v2536_v36  ;;  %v2543_v5 = vsub.f32 %v2521_v17, %v2536_v36  ;;  %v2553_v12 = vadd.f32 %v2546_v6, %v2545_v62 }
 0x5d0   :  { %v2544_v4 = vsub.f32 %v2523_v35, %v2536_v36 }
 0x5d1   :  { %v2554_v44 = vadd.f32 %v2553_v12, %v2547_v40  ;;  %v2549_v46 = vmul.f32 %v2541_v32, %v2541_v32  ;;  %v2550_v25 = vmul.f32 %v2542_v22, %v2542_v22  ;;  %v2551_v26 = vmul.f32 %v2543_v5, %v2543_v5 }
 0x5d2   :  { %v2552_v61 = vmul.f32 %v2544_v4, %v2544_v4 }
 0x5d3   :  { %v2555_v56 = vadd.f32 %v2554_v44, %v2548_v9  ;;  %v2558_v48 = vadd.f32 %v2550_v25, %v2549_v46 }
 0x5d5   :  { %2556 = vadd.xlane.f32.xlu0 %v2555_v56  ;;  %v2559_v10 = vadd.f32 %v2558_v48, %v2551_v26 }
 0x5d7   :  { %v2560_v53 = vadd.f32 %v2559_v10, %v2552_v61 }
 0x5d9   :  { %2561 = vadd.xlane.f32.xlu1 %v2560_v53 }
 0x65e   :  { %v2557_v42 = vpop.xlane.xlu0 %2556 }
 0x65f   :  { %v2563_v49 = vmul.f32 0.001953125, %v2557_v42  ;;  %v2674_v42 = vshrl.u32 %v6030_v21, 7 }
 0x661   :  { %v2567_v34 = vadd.f32 1e-05, %v2563_v49 }
 0x662   :  { %v2562_v43 = vpop.xlane.xlu1 %2561 }
 0x663   :  { %3706 = vrsqrt.f32 %v2567_v34  ;;  %v2564_v30 = vmul.f32 0.001953125, %v2562_v43 }
 0x665   :  { %v2568_v63 = vadd.f32 1e-05, %v2564_v30 }
 0x667   :  { %3708 = vrsqrt.f32 %v2568_v63 }
 0x670   :  { %v3707_v2 = vpop.eup %3706 }
 0x671   :  { %v2571_v47 = vmul.f32 %v3707_v2, %v2565_v11 }
 0x673   :  { %2575 = vperm.xlu0 %3355, %v2571_v47  }
 0x674   :  { %v3709_v13 = vpop.eup %3708 }
 0x675   :  { %v2572_v7 = vmul.f32 %v3709_v13, %v2566_v18  ;;  %v2675_v18 = vsub.s32 0, %v2674_v42 }
 0x677   :  { %2580 = vperm.xlu1 %3356, %v2572_v7   ;;  %2600 = vperm.xlu0 %3355, %v2592_v41  }
 0x67b   :  { %2595 = vperm.xlu1 %3356, %v2591_v23   ;;  %2628 = vperm.xlu0 %3355, %v2620_v37  }
 0x67f   :  { %2623 = vperm.xlu1 %3356, %v2619_v60  }
 0x683   :  { %2670 = vperm.xlu1 %3356, %v2667_v16  }
 0x6ee   :  { %v2576_v51 = vpop.permute.xlu0 %2575 }
 0x6ef   :  { %v2583_v24 = vmul.f32 %v2576_v51, %v5529_v45  ;;  %v2584_v14 = vmul.f32 %v2576_v51, %v5531_v55  ;;  %v2585_v57 = vmul.f32 %v2576_v51, %v5533_v0  ;;  %v2586_v50 = vmul.f32 %v2576_v51, %v5535_v29 }
 0x6f2   :  { %v2581_v27 = vpop.permute.xlu1 %2580  ;;  %v2601_v1 = vpop.permute.xlu0 %2600 }
 0x6f3   :  { %v2587_v58 = vmul.f32 %v2581_v27, %v2541_v32  ;;  %v2588_v39 = vmul.f32 %v2581_v27, %v2542_v22  ;;  %v2589_v52 = vmul.f32 %v2581_v27, %v2543_v5  ;;  %v2590_v38 = vmul.f32 %v2581_v27, %v2544_v4 }
 0x6f5   :  { %v2607_v59 = vadd.f32 %v2601_v1, %v2587_v58  ;;  %v2608_v8 = vadd.f32 %v2601_v1, %v2588_v39  ;;  %v2609_v20 = vadd.f32 %v2601_v1, %v2589_v52  ;;  %v2610_v19 = vadd.f32 %v2601_v1, %v2590_v38 }
 0x6f6   :  { %v2596_v17 = vpop.permute.xlu1 %2595  ;;  %v2629_v0 = vpop.permute.xlu0 %2628 }
 0x6f7   :  { %v2603_v3 = vadd.f32 %v2596_v17, %v2583_v24  ;;  %v2604_v33 = vadd.f32 %v2596_v17, %v2584_v14  ;;  %v2605_v35 = vadd.f32 %v2596_v17, %v2585_v57  ;;  %v2606_v54 = vadd.f32 %v2596_v17, %v2586_v50 }
 0x6f8   :  { %v2615_v31 = vmax.f32 %v2607_v59, 0.0  ;;  %v2616_v15 = vmax.f32 %v2608_v8, 0.0  ;;  %v2617_v28 = vmax.f32 %v2609_v20, 0.0  ;;  %v2618_v36 = vmax.f32 %v2610_v19, 0.0 }
 0x6f9   :  { %v2611_v45 = vmax.f32 %v2603_v3, 0.0  ;;  %v2612_v62 = vmax.f32 %v2604_v33, 0.0  ;;  %v2613_v55 = vmax.f32 %v2605_v35, 0.0  ;;  %v2614_v6 = vmax.f32 %v2606_v54, 0.0 }
 0x6fa   :  { %v2635_v40 = vmul.f32 %v2629_v0, %v2615_v31  ;;  %v2636_v29 = vmul.f32 %v2629_v0, %v2616_v15  ;;  %v2637_v32 = vmul.f32 %v2629_v0, %v2617_v28  ;;  %v2638_v22 = vmul.f32 %v2629_v0, %v2618_v36  ;;  %v2624_v5 = vpop.permute.xlu1 %2623 }
 0x6fb   :  { %v2631_v12 = vmul.f32 %v2624_v5, %v2611_v45  ;;  %v2632_v9 = vmul.f32 %v2624_v5, %v2612_v62  ;;  %v2633_v44 = vmul.f32 %v2624_v5, %v2613_v55  ;;  %v2634_v4 = vmul.f32 %v2624_v5, %v2614_v6 }
 0x6fc   :  { %v3735_v6 = vmov 1966171168  }
 0x6fd   :  { %v2639_v46 = vadd.f32 %v2635_v40, %v2631_v12  ;;  %v2646_v25 = vadd.f32 %v2636_v29, %v2632_v9  ;;  %v2653_v56 = vadd.f32 %v2637_v32, %v2633_v44  ;;  %v2660_v26 = vadd.f32 %v2638_v22, %v2634_v4 }
 0x6fe   :  { %v2671_v37 = vpop.permute.xlu1 %2670  ;;  %v2708_v0 = vunpack.c.l.s4 %v3735_v6 }
 0x6ff   :  { %v2640_v48 = vrot.slane %v2639_v46, 4  ;;  %v2647_v61 = vrot.slane %v2646_v25, 4  ;;  %v2654_v10 = vrot.slane %v2653_v56, 4  ;;  %v2661_v53 = vrot.slane %v2660_v26, 4 }
 0x700   :  { %v2676_v58 = vrot.slane %v2671_v37, %v2675_v18  ;;  %v2709_v40 = vunpack.c.0.s8 %v2708_v0 }
 0x701   :  { %v2641_v49 = vadd.f32 %v2640_v48, %v2639_v46  ;;  %v2648_v34 = vadd.f32 %v2647_v61, %v2646_v25  ;;  %v2655_v43 = vadd.f32 %v2654_v10, %v2653_v56  ;;  %v2662_v30 = vadd.f32 %v2661_v53, %v2660_v26 }
 0x702   :  { %v2712_v32 = vsub.s32 %v2709_v40, %v2674_v42 }
 0x703   :  { %v2642_v63 = vrot.slane %v2641_v49, 2  ;;  %v2649_v11 = vrot.slane %v2648_v34, 2  ;;  %v2656_v2 = vrot.slane %v2655_v43, 2  ;;  %v2663_v47 = vrot.slane %v2662_v30, 2 }
 0x705   :  { %v2643_v13 = vadd.f32 %v2642_v63, %v2641_v49  ;;  %v2650_v41 = vadd.f32 %v2649_v11, %v2648_v34  ;;  %v2657_v7 = vadd.f32 %v2656_v2, %v2655_v43  ;;  %v2664_v23 = vadd.f32 %v2663_v47, %v2662_v30 }
 0x707   :  { %v2644_v60 = vrot.slane %v2643_v13, 1  ;;  %v2651_v16 = vrot.slane %v2650_v41, 1  ;;  %v2658_v51 = vrot.slane %v2657_v7, 1  ;;  %v2665_v27 = vrot.slane %v2664_v23, 1 }
 0x709   :  { %v2645_v39 = vadd.f32 %v2644_v60, %v2643_v13  ;;  %v2652_v52 = vadd.f32 %v2651_v16, %v2650_v41  ;;  %v2659_v38 = vadd.f32 %v2658_v51, %v2657_v7  ;;  %v2666_v1 = vadd.f32 %v2665_v27, %v2664_v23 }
 0x70b   :  { %v2677_v24 = vadd.f32 %v2676_v58, %v2645_v39  ;;  %v2678_v14 = vadd.f32 %v2676_v58, %v2652_v52  ;;  %v2679_v57 = vadd.f32 %v2676_v58, %v2659_v38  ;;  %v2680_v50 = vadd.f32 %v2676_v58, %v2666_v1 }
 0x70d   :  { %v2681_v59 = vsub.f32 0.0, %v2677_v24  ;;  %v2682_v8 = vsub.f32 0.0, %v2678_v14  ;;  %v2683_v20 = vsub.f32 0.0, %v2679_v57  ;;  %v2684_v19 = vsub.f32 0.0, %v2680_v50 }
 0x70f   :  { %v2685_v17 = vmul.f32 1.442695, %v2681_v59  ;;  %v2687_v3 = vmul.f32 1.442695, %v2682_v8  ;;  %v2689_v33 = vmul.f32 1.442695, %v2683_v20 }
 0x710   :  { %v2691_v35 = vmul.f32 1.442695, %v2684_v19 }
 0x711   :  { %3710 = vpow2.f32 %v2685_v17 }
 0x712   :  { %3712 = vpow2.f32 %v2687_v3 }
 0x713   :  { %3714 = vpow2.f32 %v2689_v33 }
 0x714   :  { %3716 = vpow2.f32 %v2691_v35 }
 0x71e   :  { %v3711_v54 = vpop.eup %3710 }
 0x71f   :  { %v3713_v31 = vpop.eup %3712  ;;  %v2693_v15 = vadd.f32 1.0, %v3711_v54 }
 0x720   :  { %v3715_v28 = vpop.eup %3714  ;;  %v2694_v36 = vadd.f32 1.0, %v3713_v31 }
 0x721   :  { %v3717_v45 = vpop.eup %3716  ;;  %v2695_v62 = vadd.f32 1.0, %v3715_v28  ;;  %3718 = vrcp.f32 %v2693_v15 }
 0x722   :  { %v2696_v55 = vadd.f32 1.0, %v3717_v45  ;;  %3720 = vrcp.f32 %v2694_v36 }
 0x723   :  { %3722 = vrcp.f32 %v2695_v62 }
 0x724   :  { %3724 = vrcp.f32 %v2696_v55 }
 0x72e   :  { %v3719_v29 = vpop.eup %3718 }
 0x72f   :  { %v3721_v22 = vpop.eup %3720 }
 0x730   :  { %v3723_v5 = vpop.eup %3722  ;;  %v2705_v12 = vcombine.low %v3719_v29, %v3721_v22 }
 0x731   :  { %v3725_v9 = vpop.eup %3724 }
 0x732   :  { %v2706_v44 = vcombine.low %v3723_v5, %v3725_v9  ;;  %v2713_v4 = vrot.slane %v2705_v12, %v2712_v32 }
 0x734   :  { %v2720_v46 = vrot.slane %v2706_v44, %v2712_v32 }
 0x736   :  { %v2721_v25 = vcombine.low %v2713_v4, %v2720_v46 }
 0x738   :  { %v2728_v56 = vrot.slane %v2721_v25, %v2712_v32 }
 0x73a   :  { %2734 = vst.msk [vmem:[%s5584_s9] sm:$0xf] %vm2732_vm6, %v2728_v56 }

</bundles_post_ra>
